<compile_context>
chip_gen: v5e
topology: v5e:2x2
jax: 0.10.0
libtpu: 0.0.40
codegen_flags: <defaults>
</compile_context>

<pallas_src>
import functools
from collections import Counter

import numpy as np
import jax
import jax.numpy as jnp
from jax import lax
from jax.experimental import pallas as pl
from jax.experimental.pallas import tpu as pltpu


def _memory_kernel(tgt_ref, q_ref, keys_ref, vals_ref,
                   fetched_ref, loss_ref, *,
                   alpha, need_norm, b_tile, n_hw, m_sz):
    t = pl.program_id(0)
    M = b_tile * n_hw

    q = q_ref[...]                                   # (M, key_dim) f32
    if need_norm:
        ss = jnp.sum(q * q, axis=-1, keepdims=True)
        # == q / max(||q||, 1e-12)  (F.normalize semantics)
        q = q * lax.rsqrt(jnp.maximum(ss, 1e-24))

    keys_t = keys_ref[...]                           # (key_dim, m_sz) f32, lane-dense
    # One batched (M, K) @ (K, m_sz) contraction on the MXU for the whole tile.
    sims = jnp.dot(q, keys_t, preferred_element_type=jnp.float32)   # (M, m_sz)

    vals_row = vals_ref[...]                         # (1, m_sz) int32

    # ---- nearest memory slot per query position (torch.topk k=1, first max) ----
    lane = lax.broadcasted_iota(jnp.int32, (M, m_sz), 1)
    max_sim = jnp.max(sims, axis=-1, keepdims=True)              # (M, 1)
    first_idx = jnp.min(jnp.where(sims >= max_sim, lane, m_sz),
                        axis=-1, keepdims=True)                  # (M, 1) argmax
    nv = jnp.sum(jnp.where(lane == first_idx, vals_row, 0),
                 axis=-1, keepdims=True)                         # (M, 1) nearest m_vals

    # Hoisted constants for the per-image epilogue.
    row_col = lax.broadcasted_iota(jnp.int32, (n_hw, 1), 0)
    diag = (lax.broadcasted_iota(jnp.int32, (n_hw, n_hw), 0) ==
            lax.broadcasted_iota(jnp.int32, (n_hw, n_hw), 1))
    inv_n_hw = 1.0 / n_hw

    # Static (unrolled) loop over the images in this batch tile; all slices
    # below are static and sublane-aligned by construction of b_tile.
    for b in range(b_tile):
        idx = t * b_tile + b
        tgt_b = tgt_ref[idx]                                     # scalar int32

        lo, hi = b * n_hw, (b + 1) * n_hw
        sims_b = sims[lo:hi, :]                                  # (n_hw, m_sz)
        nv_b = nv[lo:hi, :]                                      # (n_hw, 1)

        # ---- mode of nearest vals == Counter(...).most_common(1)[0][0] ----
        # Row-form of nv_b built with a diagonal select + sublane reduce
        # (avoids an explicit transpose); counts[j] = #{j' : nv[j'] == nv[j]}.
        nv_row = jnp.sum(jnp.where(diag, nv_b, 0), axis=0, keepdims=True)   # (1, n_hw)
        counts = jnp.sum((nv_b == nv_row).astype(jnp.int32),
                         axis=-1, keepdims=True)                 # (n_hw, 1)
        max_cnt = jnp.max(counts)
        best_row = jnp.min(jnp.where(counts == max_cnt, row_col, n_hw))
        fetched_b = jnp.sum(jnp.where(row_col == best_row, nv_b, 0))
        fetched_ref[idx] = fetched_b

        # ---- margin loss against positive / negative slots ----
        # Keep the reference's zero-fill multiply-mask semantics exactly
        # (neg = sims - pos is bit-identical to sims * (1 - cmask)).
        cmask = (vals_row == tgt_b).astype(jnp.float32)          # (1, m_sz)
        pos = sims_b * cmask
        neg = sims_b - pos
        npos = jnp.max(pos, axis=-1, keepdims=True)              # (n_hw, 1)
        nneg = jnp.max(neg, axis=-1, keepdims=True)              # (n_hw, 1)
        has_pos = jnp.sum(cmask) > 0.0
        per_q = jnp.where(has_pos,
                          jnp.maximum(nneg - npos + alpha, 0.0),
                          jnp.maximum(nneg + alpha, 0.0))
        loss_ref[idx] = jnp.sum(per_q) * inv_n_hw

    # TODO(synk): training-time in-place memory updates (slot merge, writeback
    # of m_keys/m_vals/m_ages) and the use_centroid / del_noisy_slots /
    # upd_centroids paths are stateful scatter maintenance on buffers and are
    # not part of this eval-mode forward kernel.


def _pick_b_tile(bs, n_hw, m_sz):
    """Largest batch tile that divides bs, keeps the matmul M dim in the few-
    hundred-row range (without blowing the (M, m_sz) sims working set), and
    keeps the q block sublane-aligned (or spans the whole batch)."""
    rows_cap = max(n_hw, min(1024, (4 << 20) // (4 * max(m_sz, 1))))
    target_rows = min(max(256, n_hw), rows_cap)
    cap = max(1, target_rows // n_hw)
    candidates = [d for d in range(1, bs + 1)
                  if bs % d == 0 and (d == bs or (d * n_hw) % 8 == 0)]
    small = [d for d in candidates if d <= cap]
    return max(small) if small else min(candidates)


def memory_forward(queries, targets, m_keys, m_vals, *, alpha=0.1, need_norm=True):
    """queries: [bs, C, H, W] (NCHW); targets: [bs] int. Returns (fetched_vals, memory_loss)."""
    bs, n_c, n_h, n_w = queries.shape
    n_hw = n_h * n_w
    m_sz, key_dim = m_keys.shape
    assert n_hw <= m_sz and n_c == key_dim

    # NCHW -> (bs*n_hw, key_dim): each image is a contiguous row block with
    # key_dim on the lane axis.
    q = jnp.transpose(queries.reshape(bs, n_c, n_hw), (0, 2, 1))
    q = q.reshape(bs * n_hw, n_c).astype(jnp.float32)
    keys_t = jnp.transpose(m_keys.astype(jnp.float32))       # (key_dim, m_sz), lane-dense
    vals2d = m_vals.reshape(1, m_sz).astype(jnp.int32)
    tgt = targets.astype(jnp.int32)

    b_tile = _pick_b_tile(bs, n_hw, m_sz)
    n_tiles = bs // b_tile
    M = b_tile * n_hw

    kernel = functools.partial(_memory_kernel, alpha=float(alpha),
                               need_norm=need_norm, b_tile=b_tile,
                               n_hw=n_hw, m_sz=m_sz)
    fetched, loss_per_img = pl.pallas_call(
        kernel,
        out_shape=(jax.ShapeDtypeStruct((bs,), jnp.int32),
                   jax.ShapeDtypeStruct((bs,), jnp.float32)),
        grid_spec=pltpu.PrefetchScalarGridSpec(
            num_scalar_prefetch=1,
            grid=(n_tiles,),
            in_specs=[
                pl.BlockSpec((M, key_dim), lambda t, tgt_sref: (t, 0)),
                # keys / vals are reused by every grid step (constant index map).
                # TODO(synk): for memories too large to keep VMEM-resident
                # (v7x 64 MiB), add an m_sz grid axis with online max/argmax and
                # single-buffered (pl.Buffered(1)) keys blocks.
                pl.BlockSpec((key_dim, m_sz), lambda t, tgt_sref: (0, 0)),
                pl.BlockSpec((1, m_sz), lambda t, tgt_sref: (0, 0)),
            ],
            out_specs=[
                pl.BlockSpec(memory_space=pltpu.MemorySpace.SMEM),
                pl.BlockSpec(memory_space=pltpu.MemorySpace.SMEM),
            ],
        ),
        # Per-image outputs land in disjoint SMEM slots, so there is no
        # loop-carried accumulator; the axis stays "arbitrary" because the
        # unblocked SMEM outputs are shared across grid steps.
        # TODO(synk): blocked per-tile outputs + "parallel" semantics to shard
        # the batch-tile axis across the two v7x TensorCores.
        compiler_params=pltpu.CompilerParams(dimension_semantics=("arbitrary",)),
    )(tgt, q, keys_t, vals2d)
    return fetched, jnp.sum(loss_per_img)


def reference_forward(q_nchw, targets, m_keys, m_vals, alpha=0.1):
    """Pure numpy mirror of the PyTorch eval-mode forward."""
    bs, c, h, w = q_nchw.shape
    n_hw = h * w
    q = q_nchw.reshape(bs, c, n_hw).transpose(0, 2, 1)
    q = q / np.maximum(np.linalg.norm(q, axis=-1, keepdims=True), 1e-12)
    fetched = np.zeros((bs,), np.int32)
    loss = np.float32(0.0)
    for i in range(bs):
        sims = q[i] @ m_keys.T                       # (n_hw, m_sz)
        nearest = m_vals[np.argmax(sims, axis=-1)]
        fetched[i] = np.int32(Counter(list(nearest)).most_common(1)[0][0])
        cmask = (m_vals == targets[i]).astype(np.float32)
        pos = sims * cmask[None, :]
        neg = sims * (1.0 - cmask)[None, :]
        npos = pos.max(-1)
        nneg = neg.max(-1)
        if cmask.sum() == 0:
            loss += np.maximum(nneg + alpha, 0.0).mean()
        else:
            loss += np.maximum(nneg - npos + alpha, 0.0).mean()
    return fetched, np.float32(loss)


if __name__ == "__main__":
    key = jax.random.PRNGKey(0)
    bs, C, H, W = 2, 32, 8, 8           # n_hw = 64
    m_sz, key_dim = 128, 32
    alpha = 0.1

    k1, k2, k3 = jax.random.split(key, 3)
    # Buffers per Memory.__init__ (deterministic, synthetic).
    m_keys = jax.random.normal(k1, (m_sz, key_dim), jnp.float32)
    m_keys = m_keys / jnp.maximum(
        jnp.sqrt(jnp.sum(m_keys * m_keys, axis=-1, keepdims=True)), 1e-12)
    m_vals_init = jnp.full((m_sz,), -1, dtype=jnp.int32)       # fresh memory, as in __init__
    # Deterministically "populated" memory to also exercise the positive branch.
    m_vals_pop = jnp.where(jnp.arange(m_sz) % 7 == 0, -1,
                           jnp.arange(m_sz) % 4).astype(jnp.int32)

    queries = jax.random.normal(k2, (bs, C, H, W), jnp.float32)
    targets = jax.random.randint(k3, (bs,), 0, 4, dtype=jnp.int32)

    for m_vals in (m_vals_init, m_vals_pop):
        fetched, loss = memory_forward(queries, targets, m_keys, m_vals, alpha=alpha)
        fetched = jax.block_until_ready(fetched)
        loss = jax.block_until_ready(loss)
        f_ref, l_ref = reference_forward(np.asarray(queries), np.asarray(targets),
                                         np.asarray(m_keys), np.asarray(m_vals), alpha)
        assert np.allclose(np.asarray(loss), l_ref, atol=1e-4, rtol=1e-4), (loss, l_ref)
        assert np.array_equal(np.asarray(fetched), f_ref), (fetched, f_ref)

    print("KERNEL_OK")
</pallas_src>

<mosaic_0001>
module attributes {stable_mosaic.version = 11 : i64} {
  func.func @_memory_kernel(%arg0: i32, %arg1: memref<2xi32, #tpu.memory_space<smem>>, %arg2: memref<128x32xf32, #tpu.memory_space<vmem>>, %arg3: memref<32x128xf32, #tpu.memory_space<vmem>>, %arg4: memref<1x128xi32, #tpu.memory_space<vmem>>, %arg5: memref<2xi32, #tpu.memory_space<smem>>, %arg6: memref<2xf32, #tpu.memory_space<smem>>) attributes {dimension_semantics = [#tpu.dimension_semantics<arbitrary>], iteration_bounds = array<i64: 1>, scalar_prefetch = 1 : i64, scratch_operands = 0 : i64, tpu.core_type = #tpu.core_type<tc>, window_params = [{transform_indices = @transform_0, window_bounds = array<i64: 128, 32>}, {pipeline_mode = #tpu.pipeline_mode<synchronous>, transform_indices = @transform_1, window_bounds = array<i64: 32, 128>}, {pipeline_mode = #tpu.pipeline_mode<synchronous>, transform_indices = @transform_2, window_bounds = array<i64: 1, 128>}, {transform_indices = @transform_3, window_bounds = array<i64: 2>}, {transform_indices = @transform_4, window_bounds = array<i64: 2>}]} {
    %c0 = arith.constant 0 : index
    %c0_0 = arith.constant 0 : index
    %0 = vector.load %arg2[%c0, %c0_0] : memref<128x32xf32, #tpu.memory_space<vmem>>, vector<128x32xf32>
    %1 = arith.mulf %0, %0 : vector<128x32xf32>
    %cst = arith.constant dense<0.000000e+00> : vector<128xf32>
    %2 = vector.multi_reduction <add>, %1, %cst [1] : vector<128x32xf32> to vector<128xf32>
    %3 = vector.shape_cast %2 : vector<128xf32> to vector<128x1xf32>
    %cst_1 = arith.constant 1.000000e-24 : f32
    %4 = vector.broadcast %cst_1 : f32 to vector<128x1xf32>
    %5 = arith.maximumf %3, %4 : vector<128x1xf32>
    %6 = math.rsqrt %5 : vector<128x1xf32>
    %7 = vector.broadcast %6 : vector<128x1xf32> to vector<128x32xf32>
    %8 = arith.mulf %0, %7 : vector<128x32xf32>
    %c0_2 = arith.constant 0 : index
    %c0_3 = arith.constant 0 : index
    %9 = vector.load %arg3[%c0_2, %c0_3] : memref<32x128xf32, #tpu.memory_space<vmem>>, vector<32x128xf32>
    %cst_4 = arith.constant dense<0.000000e+00> : vector<128x128xf32>
    %10 = tpu.matmul %8, %9, %cst_4 {dimension_numbers = #tpu.dot_dimension_numbers<[1], [0], [0], [1], [0, 0, 1, 1], [], []>} : vector<128x32xf32>, vector<32x128xf32>, vector<128x128xf32> -> vector<128x128xf32>
    %c0_5 = arith.constant 0 : index
    %c0_6 = arith.constant 0 : index
    %11 = vector.load %arg4[%c0_5, %c0_6] : memref<1x128xi32, #tpu.memory_space<vmem>>, vector<1x128xi32>
    %12 = tpu.iota {dimensions = array<i32: 1>} : vector<128x128xi32>
    %cst_7 = arith.constant dense<0xFF800000> : vector<128xf32>
    %13 = vector.multi_reduction <maximumf>, %10, %cst_7 [1] : vector<128x128xf32> to vector<128xf32>
    %14 = vector.shape_cast %13 : vector<128xf32> to vector<128x1xf32>
    %15 = vector.broadcast %14 : vector<128x1xf32> to vector<128x128xf32>
    %16 = arith.cmpf oge, %10, %15 : vector<128x128xf32>
    %c128_i32 = arith.constant 128 : i32
    %17 = vector.broadcast %c128_i32 : i32 to vector<128x128xi32>
    %18 = arith.select %16, %12, %17 : vector<128x128xi1>, vector<128x128xi32>
    %cst_8 = arith.constant dense<2147483647> : vector<128xi32>
    %19 = vector.multi_reduction <minsi>, %18, %cst_8 [1] : vector<128x128xi32> to vector<128xi32>
    %20 = vector.shape_cast %19 : vector<128xi32> to vector<128x1xi32>
    %21 = vector.broadcast %20 : vector<128x1xi32> to vector<128x128xi32>
    %22 = arith.cmpi eq, %12, %21 : vector<128x128xi32>
    %c0_i32 = arith.constant 0 : i32
    %23 = vector.shape_cast %11 : vector<1x128xi32> to vector<1x128xi32>
    %24 = vector.broadcast %23 : vector<1x128xi32> to vector<128x128xi32>
    %25 = vector.broadcast %c0_i32 : i32 to vector<128x128xi32>
    %26 = arith.select %22, %24, %25 : vector<128x128xi1>, vector<128x128xi32>
    %cst_9 = arith.constant dense<0> : vector<128xi32>
    %27 = vector.multi_reduction <add>, %26, %cst_9 [1] : vector<128x128xi32> to vector<128xi32>
    %28 = vector.shape_cast %27 : vector<128xi32> to vector<128x1xi32>
    %29 = tpu.iota {dimensions = array<i32: 0>} : vector<64x1xi32>
    %30 = tpu.iota {dimensions = array<i32: 0>} : vector<64x64xi32>
    %31 = tpu.iota {dimensions = array<i32: 1>} : vector<64x64xi32>
    %32 = arith.cmpi eq, %30, %31 : vector<64x64xi32>
    %c2_i32 = arith.constant 2 : i32
    %33 = arith.muli %arg0, %c2_i32 : i32
    %c0_i32_10 = arith.constant 0 : i32
    %34 = arith.addi %33, %c0_i32_10 : i32
    %35 = arith.index_cast %34 : i32 to index
    %36 = memref.load %arg1[%35] : memref<2xi32, #tpu.memory_space<smem>>
    %37 = vector.extract_strided_slice %10 {offsets = [0, 0], sizes = [64, 128], strides = [1, 1]} : vector<128x128xf32> to vector<64x128xf32>
    %38 = vector.extract_strided_slice %28 {offsets = [0, 0], sizes = [64, 1], strides = [1, 1]} : vector<128x1xi32> to vector<64x1xi32>
    %c0_i32_11 = arith.constant 0 : i32
    %39 = vector.shape_cast %38 : vector<64x1xi32> to vector<64x1xi32>
    %40 = vector.broadcast %39 : vector<64x1xi32> to vector<64x64xi32>
    %41 = vector.broadcast %c0_i32_11 : i32 to vector<64x64xi32>
    %42 = arith.select %32, %40, %41 : vector<64x64xi1>, vector<64x64xi32>
    %cst_12 = arith.constant dense<0> : vector<64xi32>
    %43 = vector.multi_reduction <add>, %42, %cst_12 [0] : vector<64x64xi32> to vector<64xi32>
    %44 = vector.shape_cast %43 : vector<64xi32> to vector<1x64xi32>
    %45 = vector.broadcast %38 : vector<64x1xi32> to vector<64x64xi32>
    %46 = vector.broadcast %44 : vector<1x64xi32> to vector<64x64xi32>
    %47 = arith.cmpi eq, %45, %46 : vector<64x64xi32>
    %48 = arith.extui %47 : vector<64x64xi1> to vector<64x64xi32>
    %cst_13 = arith.constant dense<0> : vector<64xi32>
    %49 = vector.multi_reduction <add>, %48, %cst_13 [1] : vector<64x64xi32> to vector<64xi32>
    %50 = vector.shape_cast %49 : vector<64xi32> to vector<64x1xi32>
    %51 = vector.shape_cast %50 : vector<64x1xi32> to vector<1x64x1xi32>
    %cst_14 = arith.constant dense<-2147483648> : vector<1xi32>
    %52 = vector.multi_reduction <maxsi>, %51, %cst_14 [1, 2] : vector<1x64x1xi32> to vector<1xi32>
    %53 = vector.shape_cast %52 : vector<1xi32> to vector<1x1x1xi32>
    %54 = vector.extract %53[0, 0, 0] : i32 from vector<1x1x1xi32>
    %55 = vector.broadcast %54 : i32 to vector<64x1xi32>
    %56 = arith.cmpi eq, %50, %55 : vector<64x1xi32>
    %c64_i32 = arith.constant 64 : i32
    %57 = vector.broadcast %c64_i32 : i32 to vector<64x1xi32>
    %58 = arith.select %56, %29, %57 : vector<64x1xi1>, vector<64x1xi32>
    %59 = vector.shape_cast %58 : vector<64x1xi32> to vector<1x64x1xi32>
    %cst_15 = arith.constant dense<2147483647> : vector<1xi32>
    %60 = vector.multi_reduction <minsi>, %59, %cst_15 [1, 2] : vector<1x64x1xi32> to vector<1xi32>
    %61 = vector.shape_cast %60 : vector<1xi32> to vector<1x1x1xi32>
    %62 = vector.extract %61[0, 0, 0] : i32 from vector<1x1x1xi32>
    %63 = vector.broadcast %62 : i32 to vector<64x1xi32>
    %64 = arith.cmpi eq, %29, %63 : vector<64x1xi32>
    %c0_i32_16 = arith.constant 0 : i32
    %65 = vector.broadcast %c0_i32_16 : i32 to vector<64x1xi32>
    %66 = arith.select %64, %38, %65 : vector<64x1xi1>, vector<64x1xi32>
    %67 = vector.shape_cast %66 : vector<64x1xi32> to vector<1x64x1xi32>
    %cst_17 = arith.constant dense<0> : vector<1xi32>
    %68 = vector.multi_reduction <add>, %67, %cst_17 [1, 2] : vector<1x64x1xi32> to vector<1xi32>
    %69 = vector.shape_cast %68 : vector<1xi32> to vector<1x1x1xi32>
    %70 = vector.extract %69[0, 0, 0] : i32 from vector<1x1x1xi32>
    %71 = arith.index_cast %34 : i32 to index
    %72 = memref.load %arg5[%71] : memref<2xi32, #tpu.memory_space<smem>>
    memref.store %70, %arg5[%71] : memref<2xi32, #tpu.memory_space<smem>>
    %73 = vector.broadcast %36 : i32 to vector<1x128xi32>
    %74 = arith.cmpi eq, %11, %73 : vector<1x128xi32>
    %75 = arith.extui %74 : vector<1x128xi1> to vector<1x128xi32>
    %76 = arith.sitofp %75 : vector<1x128xi32> to vector<1x128xf32>
    %77 = vector.broadcast %76 : vector<1x128xf32> to vector<64x128xf32>
    %78 = arith.mulf %37, %77 : vector<64x128xf32>
    %79 = arith.subf %37, %78 : vector<64x128xf32>
    %cst_18 = arith.constant dense<0xFF800000> : vector<64xf32>
    %80 = vector.multi_reduction <maximumf>, %78, %cst_18 [1] : vector<64x128xf32> to vector<64xf32>
    %81 = vector.shape_cast %80 : vector<64xf32> to vector<64x1xf32>
    %cst_19 = arith.constant dense<0xFF800000> : vector<64xf32>
    %82 = vector.multi_reduction <maximumf>, %79, %cst_19 [1] : vector<64x128xf32> to vector<64xf32>
    %83 = vector.shape_cast %82 : vector<64xf32> to vector<64x1xf32>
    %84 = vector.shape_cast %76 : vector<1x128xf32> to vector<1x1x128xf32>
    %cst_20 = arith.constant dense<0.000000e+00> : vector<1xf32>
    %85 = vector.multi_reduction <add>, %84, %cst_20 [1, 2] : vector<1x1x128xf32> to vector<1xf32>
    %86 = vector.shape_cast %85 : vector<1xf32> to vector<1x1x1xf32>
    %87 = vector.extract %86[0, 0, 0] : f32 from vector<1x1x1xf32>
    %cst_21 = arith.constant 0.000000e+00 : f32
    %88 = arith.cmpf ogt, %87, %cst_21 : f32
    %89 = arith.subf %83, %81 : vector<64x1xf32>
    %cst_22 = arith.constant 1.000000e-01 : f32
    %90 = vector.broadcast %cst_22 : f32 to vector<64x1xf32>
    %91 = arith.addf %89, %90 : vector<64x1xf32>
    %cst_23 = arith.constant 0.000000e+00 : f32
    %92 = vector.broadcast %cst_23 : f32 to vector<64x1xf32>
    %93 = arith.maximumf %91, %92 : vector<64x1xf32>
    %cst_24 = arith.constant 1.000000e-01 : f32
    %94 = vector.broadcast %cst_24 : f32 to vector<64x1xf32>
    %95 = arith.addf %83, %94 : vector<64x1xf32>
    %cst_25 = arith.constant 0.000000e+00 : f32
    %96 = vector.broadcast %cst_25 : f32 to vector<64x1xf32>
    %97 = arith.maximumf %95, %96 : vector<64x1xf32>
    %98 = arith.select %88, %93, %97 : vector<64x1xf32>
    %99 = vector.shape_cast %98 : vector<64x1xf32> to vector<1x64x1xf32>
    %cst_26 = arith.constant dense<0.000000e+00> : vector<1xf32>
    %100 = vector.multi_reduction <add>, %99, %cst_26 [1, 2] : vector<1x64x1xf32> to vector<1xf32>
    %101 = vector.shape_cast %100 : vector<1xf32> to vector<1x1x1xf32>
    %102 = vector.extract %101[0, 0, 0] : f32 from vector<1x1x1xf32>
    %cst_27 = arith.constant 1.562500e-02 : f32
    %103 = arith.mulf %102, %cst_27 : f32
    %104 = arith.index_cast %34 : i32 to index
    %105 = memref.load %arg6[%104] : memref<2xf32, #tpu.memory_space<smem>>
    memref.store %103, %arg6[%104] : memref<2xf32, #tpu.memory_space<smem>>
    %c2_i32_28 = arith.constant 2 : i32
    %106 = arith.muli %arg0, %c2_i32_28 : i32
    %c1_i32 = arith.constant 1 : i32
    %107 = arith.addi %106, %c1_i32 : i32
    %108 = arith.index_cast %107 : i32 to index
    %109 = memref.load %arg1[%108] : memref<2xi32, #tpu.memory_space<smem>>
    %110 = vector.extract_strided_slice %10 {offsets = [64, 0], sizes = [64, 128], strides = [1, 1]} : vector<128x128xf32> to vector<64x128xf32>
    %111 = vector.extract_strided_slice %28 {offsets = [64, 0], sizes = [64, 1], strides = [1, 1]} : vector<128x1xi32> to vector<64x1xi32>
    %c0_i32_29 = arith.constant 0 : i32
    %112 = vector.shape_cast %111 : vector<64x1xi32> to vector<64x1xi32>
    %113 = vector.broadcast %112 : vector<64x1xi32> to vector<64x64xi32>
    %114 = vector.broadcast %c0_i32_29 : i32 to vector<64x64xi32>
    %115 = arith.select %32, %113, %114 : vector<64x64xi1>, vector<64x64xi32>
    %cst_30 = arith.constant dense<0> : vector<64xi32>
    %116 = vector.multi_reduction <add>, %115, %cst_30 [0] : vector<64x64xi32> to vector<64xi32>
    %117 = vector.shape_cast %116 : vector<64xi32> to vector<1x64xi32>
    %118 = vector.broadcast %111 : vector<64x1xi32> to vector<64x64xi32>
    %119 = vector.broadcast %117 : vector<1x64xi32> to vector<64x64xi32>
    %120 = arith.cmpi eq, %118, %119 : vector<64x64xi32>
    %121 = arith.extui %120 : vector<64x64xi1> to vector<64x64xi32>
    %cst_31 = arith.constant dense<0> : vector<64xi32>
    %122 = vector.multi_reduction <add>, %121, %cst_31 [1] : vector<64x64xi32> to vector<64xi32>
    %123 = vector.shape_cast %122 : vector<64xi32> to vector<64x1xi32>
    %124 = vector.shape_cast %123 : vector<64x1xi32> to vector<1x64x1xi32>
    %cst_32 = arith.constant dense<-2147483648> : vector<1xi32>
    %125 = vector.multi_reduction <maxsi>, %124, %cst_32 [1, 2] : vector<1x64x1xi32> to vector<1xi32>
    %126 = vector.shape_cast %125 : vector<1xi32> to vector<1x1x1xi32>
    %127 = vector.extract %126[0, 0, 0] : i32 from vector<1x1x1xi32>
    %128 = vector.broadcast %127 : i32 to vector<64x1xi32>
    %129 = arith.cmpi eq, %123, %128 : vector<64x1xi32>
    %c64_i32_33 = arith.constant 64 : i32
    %130 = vector.broadcast %c64_i32_33 : i32 to vector<64x1xi32>
    %131 = arith.select %129, %29, %130 : vector<64x1xi1>, vector<64x1xi32>
    %132 = vector.shape_cast %131 : vector<64x1xi32> to vector<1x64x1xi32>
    %cst_34 = arith.constant dense<2147483647> : vector<1xi32>
    %133 = vector.multi_reduction <minsi>, %132, %cst_34 [1, 2] : vector<1x64x1xi32> to vector<1xi32>
    %134 = vector.shape_cast %133 : vector<1xi32> to vector<1x1x1xi32>
    %135 = vector.extract %134[0, 0, 0] : i32 from vector<1x1x1xi32>
    %136 = vector.broadcast %135 : i32 to vector<64x1xi32>
    %137 = arith.cmpi eq, %29, %136 : vector<64x1xi32>
    %c0_i32_35 = arith.constant 0 : i32
    %138 = vector.broadcast %c0_i32_35 : i32 to vector<64x1xi32>
    %139 = arith.select %137, %111, %138 : vector<64x1xi1>, vector<64x1xi32>
    %140 = vector.shape_cast %139 : vector<64x1xi32> to vector<1x64x1xi32>
    %cst_36 = arith.constant dense<0> : vector<1xi32>
    %141 = vector.multi_reduction <add>, %140, %cst_36 [1, 2] : vector<1x64x1xi32> to vector<1xi32>
    %142 = vector.shape_cast %141 : vector<1xi32> to vector<1x1x1xi32>
    %143 = vector.extract %142[0, 0, 0] : i32 from vector<1x1x1xi32>
    %144 = arith.index_cast %107 : i32 to index
    %145 = memref.load %arg5[%144] : memref<2xi32, #tpu.memory_space<smem>>
    memref.store %143, %arg5[%144] : memref<2xi32, #tpu.memory_space<smem>>
    %146 = vector.broadcast %109 : i32 to vector<1x128xi32>
    %147 = arith.cmpi eq, %11, %146 : vector<1x128xi32>
    %148 = arith.extui %147 : vector<1x128xi1> to vector<1x128xi32>
    %149 = arith.sitofp %148 : vector<1x128xi32> to vector<1x128xf32>
    %150 = vector.broadcast %149 : vector<1x128xf32> to vector<64x128xf32>
    %151 = arith.mulf %110, %150 : vector<64x128xf32>
    %152 = arith.subf %110, %151 : vector<64x128xf32>
    %cst_37 = arith.constant dense<0xFF800000> : vector<64xf32>
    %153 = vector.multi_reduction <maximumf>, %151, %cst_37 [1] : vector<64x128xf32> to vector<64xf32>
    %154 = vector.shape_cast %153 : vector<64xf32> to vector<64x1xf32>
    %cst_38 = arith.constant dense<0xFF800000> : vector<64xf32>
    %155 = vector.multi_reduction <maximumf>, %152, %cst_38 [1] : vector<64x128xf32> to vector<64xf32>
    %156 = vector.shape_cast %155 : vector<64xf32> to vector<64x1xf32>
    %157 = vector.shape_cast %149 : vector<1x128xf32> to vector<1x1x128xf32>
    %cst_39 = arith.constant dense<0.000000e+00> : vector<1xf32>
    %158 = vector.multi_reduction <add>, %157, %cst_39 [1, 2] : vector<1x1x128xf32> to vector<1xf32>
    %159 = vector.shape_cast %158 : vector<1xf32> to vector<1x1x1xf32>
    %160 = vector.extract %159[0, 0, 0] : f32 from vector<1x1x1xf32>
    %cst_40 = arith.constant 0.000000e+00 : f32
    %161 = arith.cmpf ogt, %160, %cst_40 : f32
    %162 = arith.subf %156, %154 : vector<64x1xf32>
    %cst_41 = arith.constant 1.000000e-01 : f32
    %163 = vector.broadcast %cst_41 : f32 to vector<64x1xf32>
    %164 = arith.addf %162, %163 : vector<64x1xf32>
    %cst_42 = arith.constant 0.000000e+00 : f32
    %165 = vector.broadcast %cst_42 : f32 to vector<64x1xf32>
    %166 = arith.maximumf %164, %165 : vector<64x1xf32>
    %cst_43 = arith.constant 1.000000e-01 : f32
    %167 = vector.broadcast %cst_43 : f32 to vector<64x1xf32>
    %168 = arith.addf %156, %167 : vector<64x1xf32>
    %cst_44 = arith.constant 0.000000e+00 : f32
    %169 = vector.broadcast %cst_44 : f32 to vector<64x1xf32>
    %170 = arith.maximumf %168, %169 : vector<64x1xf32>
    %171 = arith.select %161, %166, %170 : vector<64x1xf32>
    %172 = vector.shape_cast %171 : vector<64x1xf32> to vector<1x64x1xf32>
    %cst_45 = arith.constant dense<0.000000e+00> : vector<1xf32>
    %173 = vector.multi_reduction <add>, %172, %cst_45 [1, 2] : vector<1x64x1xf32> to vector<1xf32>
    %174 = vector.shape_cast %173 : vector<1xf32> to vector<1x1x1xf32>
    %175 = vector.extract %174[0, 0, 0] : f32 from vector<1x1x1xf32>
    %cst_46 = arith.constant 1.562500e-02 : f32
    %176 = arith.mulf %175, %cst_46 : f32
    %177 = arith.index_cast %107 : i32 to index
    %178 = memref.load %arg6[%177] : memref<2xf32, #tpu.memory_space<smem>>
    memref.store %176, %arg6[%177] : memref<2xf32, #tpu.memory_space<smem>>
    return
  }
  func.func @transform_0(%arg0: i32, %arg1: memref<2xi32, #tpu.memory_space<smem>>) -> (i32, i32) {
    %c0_i32 = arith.constant 0 : i32
    %c0_i32_0 = arith.constant 0 : i32
    return %arg0, %c0_i32 : i32, i32
  }
  func.func @transform_1(%arg0: i32, %arg1: memref<2xi32, #tpu.memory_space<smem>>) -> (i32, i32) {
    %c0_i32 = arith.constant 0 : i32
    %c0_i32_0 = arith.constant 0 : i32
    %c0_i32_1 = arith.constant 0 : i32
    return %c0_i32, %c0_i32_0 : i32, i32
  }
  func.func @transform_2(%arg0: i32, %arg1: memref<2xi32, #tpu.memory_space<smem>>) -> (i32, i32) {
    %c0_i32 = arith.constant 0 : i32
    %c0_i32_0 = arith.constant 0 : i32
    %c0_i32_1 = arith.constant 0 : i32
    return %c0_i32, %c0_i32_0 : i32, i32
  }
  func.func @transform_3(%arg0: i32, %arg1: memref<2xi32, #tpu.memory_space<smem>>) -> i32 {
    %c0_i32 = arith.constant 0 : i32
    %c0_i32_0 = arith.constant 0 : i32
    return %c0_i32 : i32
  }
  func.func @transform_4(%arg0: i32, %arg1: memref<2xi32, #tpu.memory_space<smem>>) -> i32 {
    %c0_i32 = arith.constant 0 : i32
    %c0_i32_0 = arith.constant 0 : i32
    return %c0_i32 : i32
  }
}

</mosaic_0001>

<bundles_post_ra>
// kernel: tpu_custom_call.1
= control target key start
LH: loop header
LB: loop body
LE: loop exit
PB: predicated region body
PF: predicated region fallthrough
CT: control target
= control target key end

     0   :  { %s1902_s21 = smov [#allocation3]   ;;  %s3000_s0 = inlined_call_operand.vmem [shape: s32[2], index: 0, kind: input, shape index: {}]   ;;  %s3001_s1 = inlined_call_operand.vmem [shape: f32[128,32], index: 1, kind: input, shape index: {}]   ;;  %s3002_s2 = inlined_call_operand.vmem [shape: f32[32,128], index: 2, kind: input, shape index: {}]   ;;  %s3003_s3 = inlined_call_operand.vmem [shape: s32[1,128], index: 3, kind: input, shape index: {}]   ;;  %s3004_s4 = inlined_call_operand.hbm [shape: s32[2], index: 4, kind: output, shape index: {0}]   ;;  %s3005_s5 = inlined_call_operand.hbm [shape: f32[2], index: 5, kind: output, shape index: {1}]  }
   0x1   :  { %s12_s20 = sshll.u32 %s3000_s0, 4  ;;  %s13_s20 = int_to_ptr.vmem [resolvable:$true] %s12_s20 }
   0x2   :  { %15 = dma.vmem_to_smem %s13_s20, 16, %s1902_s21, [#allocation2] }
   0x3   :  { %1896 = dma.done.wait [#allocation2], 16 }
   0x4   :  { %1897 = vsyncadd [#allocation2], 4294967280 }
   0x5   :  { %18 = sfence }
   0x6   :  { %19 = vsyncpa [#allocation5], 0  ;;  %v1943_v0 = vld [vmem:[%s3001_s1 + $0x8] sm:$0xff]  ;;  %vm59_vm0 = vcmask 261120   ;;  %v1948_v1 = vld [vmem:[%s3001_s1] sm:$0xff] }
   0x7   :  { %v1953_v2 = vld [vmem:[%s3001_s1 + $0x10] sm:$0xff]  ;;  %v44_v3 = vmul.f32 %v1943_v0, %v1943_v0  ;;  %v43_v4 = vmul.f32 %v1948_v1, %v1948_v1  ;;  %v1964_v6 = vld [vmem:[%s3001_s1 + $0x20] sm:$0xff]  ;;  %v1969_v7 = vld [vmem:[%s3001_s1 + $0x28] sm:$0xff] }
   0x8   :  { %v45_v5 = vmul.f32 %v1953_v2, %v1953_v2 }
   0x9   :  { %20 = vsyncpa [#allocation7], 0  ;;  %v63_v8 = vsel %vm59_vm0, %v44_v3, 0.0  ;;  %v60_v9 = vsel %vm59_vm0, %v43_v4, 0.0  ;;  %v1977_v11 = vld [vmem:[%s3001_s1 + $0x30] sm:$0xff]  ;;  %v47_v12 = vmul.f32 %v1964_v6, %v1964_v6  ;;  %v48_v13 = vmul.f32 %v1969_v7, %v1969_v7  ;;  %v1990_v17 = vld [vmem:[%s3001_s1 + $0x18] sm:$0xff] }
   0xa   :  { %v66_v10 = vsel %vm59_vm0, %v45_v5, 0.0  ;;  %64 = vadd.xlane.f32.xlu1 %v63_v8  ;;  %61 = vadd.xlane.f32.xlu0 %v60_v9  ;;  %v49_v14 = vmul.f32 %v1977_v11, %v1977_v11  ;;  %v1996_v19 = vld [vmem:[%s3001_s1 + $0x38] sm:$0xff]  ;;  %v46_v20 = vmul.f32 %v1990_v17, %v1990_v17  ;;  %v302_v25 = vld [vmem:[%s3002_s2 + $0x10] sm:$0xff]  ;;  %v301_v26 = vld [vmem:[%s3002_s2 + $0x8] sm:$0xff]  ;;  %s951_s12 = sld [smem:[#allocation3]]  ;;  %s1744_s27 = sshll.u32 %s3004_s4, 4  ;;  %s1745_s27 = int_to_ptr.hbm [resolvable:$true] %s1744_s27 }
   0xb   :  { %67 = vadd.xlane.f32.xlu2 %v66_v10  ;;  %v72_v15 = vsel %vm59_vm0, %v47_v12, 0.0  ;;  %v75_v16 = vsel %vm59_vm0, %v48_v13, 0.0  ;;  %v50_v21 = vmul.f32 %v1996_v19, %v1996_v19  ;;  %v303_v24 = vld [vmem:[%s3002_s2 + $0x18] sm:$0xff]  ;;  %v300_v27 = vld [vmem:[%s3002_s2] sm:$0xff]  ;;  %s2891_s19 = sld [smem:[#allocation3 + $0x1]]  ;;  %s1905_s28 = smov [#allocation4]  }
   0xc   :  { %v78_v18 = vsel %vm59_vm0, %v49_v14, 0.0  ;;  %v69_v22 = vsel %vm59_vm0, %v46_v20, 0.0  ;;  %364 = vmatpush.msra.mxu0 %v303_v24  ;;  %1789 = vmatpush.msra.mxu1 %v303_v24  ;;  %s1753_s6 = sshll.u32 %s3005_s5, 4  ;;  %s1906_s4 = smov [#allocation6]   ;;  %s1754_s6 = int_to_ptr.hbm [resolvable:$true] %s1753_s6 }
   0xd   :  { %v81_v23 = vsel %vm59_vm0, %v50_v21, 0.0  ;;  %1790 = vmatpush.msra.mxu2 %v303_v24  ;;  %1791 = vmatpush.msra.mxu3 %v303_v24 }
   0xe   :  { %365 = vmatpush.msra.mxu0 %v302_v25  ;;  %1792 = vmatpush.msra.mxu1 %v302_v25 }
   0xf   :  { %1793 = vmatpush.msra.mxu2 %v302_v25  ;;  %1794 = vmatpush.msra.mxu3 %v302_v25 }
  0x10   :  { %366 = vmatpush.msra.mxu0 %v301_v26  ;;  %1795 = vmatpush.msra.mxu1 %v301_v26 }
  0x11   :  { %1796 = vmatpush.msra.mxu2 %v301_v26  ;;  %1797 = vmatpush.msra.mxu3 %v301_v26 }
  0x12   :  { %73 = vadd.xlane.f32.xlu0 %v72_v15  ;;  %76 = vadd.xlane.f32.xlu1 %v75_v16 }
  0x13   :  { %79 = vadd.xlane.f32.xlu2 %v78_v18  ;;  %367 = vmatpush.msra.mxu0 %v300_v27 }
  0x14   :  { %1798 = vmatpush.msra.mxu1 %v300_v27  ;;  %1799 = vmatpush.msra.mxu2 %v300_v27 }
  0x15   :  { %1800 = vmatpush.msra.mxu3 %v300_v27 }
  0x1a   :  { %70 = vadd.xlane.f32.xlu0 %v69_v22  ;;  %82 = vadd.xlane.f32.xlu1 %v81_v23 }
  0x7d   :  { %v65_v28 = vpop.xlane.xlu1 %64  ;;  %v62_v29 = vpop.xlane.xlu0 %61 }
  0x7e   :  { %v2016_v30 = vmax.f32 %v65_v28, 1e-24  ;;  %v108_v31 = vmax.f32 %v62_v29, 1e-24  ;;  %v68_v32 = vpop.xlane.xlu2 %67 }
  0x7f   :  { %v2018_v33 = vmax.f32 %v68_v32, 1e-24 }
  0x80   :  { %1827 = vrsqrt.f32 %v2016_v30  ;;  %vm130_vm2 = vweird.f32 %v108_v31  ;;  %vm140_vm4 = vweird.f32 %v2016_v30 }
  0x81   :  { %1829 = vrsqrt.f32 %v108_v31  ;;  %vm150_vm12 = vweird.f32 %v2018_v33 }
  0x82   :  { %1831 = vrsqrt.f32 %v2018_v33 }
  0x85   :  { %v74_v34 = vpop.xlane.xlu0 %73  ;;  %v77_v35 = vpop.xlane.xlu1 %76 }
  0x86   :  { %v2022_v36 = vpop.eup %1827  ;;  %v112_v37 = vmax.f32 %v74_v34, 1e-24  ;;  %v2024_v38 = vmax.f32 %v77_v35, 1e-24  ;;  %v80_v39 = vpop.xlane.xlu2 %79 }
  0x87   :  { %v1830_v40 = vpop.eup %1829  ;;  %v135_v41 = vmul.f32 %v2022_v36, %v2016_v30  ;;  %v2028_v42 = vmax.f32 %v80_v39, 1e-24  ;;  %vm141_vm5 = vweird.f32 %v2022_v36 }
  0x88   :  { %v2030_v43 = vpop.eup %1831  ;;  %v125_v44 = vmul.f32 %v1830_v40, %v108_v31  ;;  %1833 = vrsqrt.f32 %v112_v37  ;;  %vm131_vm1 = vweird.f32 %v1830_v40  ;;  %vm170_vm6 = vweird.f32 %v112_v37  ;;  %vm142_vm8 = vmor %vm140_vm4, %vm141_vm5 }
  0x89   :  { %v136_v45 = vmul.f32 %v2022_v36, %v135_v41  ;;  %1835 = vrsqrt.f32 %v2024_v38  ;;  %v145_v47 = vmul.f32 %v2030_v43, %v2018_v33  ;;  %vm132_vm3 = vmor %vm130_vm2, %vm131_vm1  ;;  %vm180_vm9 = vweird.f32 %v2024_v38 }
  0x8a   :  { %v126_v46 = vmul.f32 %v1830_v40, %v125_v44  ;;  %1837 = vrsqrt.f32 %v2028_v42  ;;  %vm151_vm13 = vweird.f32 %v2030_v43  ;;  %vm190_vm1 = vweird.f32 %v2028_v42 }
  0x8b   :  { %v137_v48 = vmul.f32 0.5, %v136_v45  ;;  %v146_v57 = vmul.f32 %v2030_v43, %v145_v47  ;;  %vm152_vm15 = vmor %vm150_vm12, %vm151_vm13 }
  0x8c   :  { %v127_v49 = vmul.f32 0.5, %v126_v46 }
  0x8d   :  { %v71_v50 = vpop.xlane.xlu0 %70  ;;  %v83_v51 = vpop.xlane.xlu1 %82  ;;  %v138_v60 = vsub.f32 1.5, %v137_v48  ;;  %v147_v10 = vmul.f32 0.5, %v146_v57 }
  0x8e   :  { %v1834_v52 = vpop.eup %1833  ;;  %v128_v53 = vsub.f32 1.5, %v127_v49  ;;  %v2037_v54 = vmax.f32 %v71_v50, 1e-24  ;;  %v2039_v55 = vmax.f32 %v83_v51, 1e-24 }
  0x8f   :  { %v1836_v56 = vpop.eup %1835  ;;  %v165_v58 = vmul.f32 %v1834_v52, %v112_v37  ;;  %v139_v13 = vmul.f32 %v2022_v36, %v138_v60  ;;  %vm171_vm7 = vweird.f32 %v1834_v52  ;;  %v148_v22 = vsub.f32 1.5, %v147_v10 }
  0x90   :  { %v2042_v59 = vpop.eup %1837  ;;  %v175_v61 = vmul.f32 %v1836_v56, %v2024_v38  ;;  %1839 = vrsqrt.f32 %v2037_v54  ;;  %v129_v62 = vmul.f32 %v1830_v40, %v128_v53  ;;  %vm172_vm10 = vmor %vm170_vm6, %vm171_vm7  ;;  %vm181_vm11 = vweird.f32 %v1836_v56 }
  0x91   :  { %v166_v63 = vmul.f32 %v1834_v52, %v165_v58  ;;  %1841 = vrsqrt.f32 %v2039_v55  ;;  %v185_v8 = vmul.f32 %v2042_v59, %v2028_v42  ;;  %v143_v23 = vsel %vm142_vm8, %v2022_v36, %v139_v13  ;;  %vm182_vm14 = vmor %vm180_vm9, %vm181_vm11 }
  0x92   :  { %v176_v3 = vmul.f32 %v1836_v56, %v175_v61  ;;  %v133_v4 = vsel %vm132_vm3, %v1830_v40, %v129_v62  ;;  %v285_v29 = vmul.f32 %v143_v23, %v1943_v0  ;;  %v149_v32 = vmul.f32 %v2030_v43, %v148_v22 }
  0x93   :  { %v167_v5 = vmul.f32 0.5, %v166_v63  ;;  %v284_v9 = vmul.f32 %v133_v4, %v1948_v1  ;;  %v186_v21 = vmul.f32 %v2042_v59, %v185_v8  ;;  %vm191_vm2 = vweird.f32 %v2042_v59 }
  0x94   :  { %v177_v12 = vmul.f32 0.5, %v176_v3  ;;  %v153_v36 = vsel %vm152_vm15, %v2030_v43, %v149_v32  ;;  %vm160_vm3 = vweird.f32 %v2037_v54  ;;  %vm192_vm5 = vmor %vm190_vm1, %vm191_vm2  ;;  %vm200_vm6 = vweird.f32 %v2039_v55 }
  0x95   :  { %v168_v14 = vsub.f32 1.5, %v167_v5  ;;  %1770 = vmatmul.msk.f32.vlgmr.msra.gmra.mxu0 %vm59_vm0, %v284_v9  ;;  %v187_v28 = vmul.f32 0.5, %v186_v21  ;;  %v286_v39 = vmul.f32 %v153_v36, %v1953_v2  ;;  %v2206_v36 = vld [vmem:[%s3001_s1 + $0x68] sm:$0xff] }
  0x96   :  { %v1840_v15 = vpop.eup %1839  ;;  %v178_v18 = vsub.f32 1.5, %v177_v12 }
  0x97   :  { %v1842_v16 = vpop.eup %1841  ;;  %v155_v20 = vmul.f32 %v1840_v15, %v2037_v54  ;;  %v169_v1 = vmul.f32 %v1834_v52, %v168_v14  ;;  %v188_v33 = vsub.f32 1.5, %v187_v28  ;;  %vm161_vm4 = vweird.f32 %v1840_v15 }
  0x98   :  { %v195_v26 = vmul.f32 %v1842_v16, %v2039_v55  ;;  %v179_v30 = vmul.f32 %v1836_v56, %v178_v18  ;;  %vm162_vm7 = vmor %vm160_vm3, %vm161_vm4  ;;  %vm201_vm8 = vweird.f32 %v1842_v16 }
  0x99   :  { %v156_v24 = vmul.f32 %v1840_v15, %v155_v20  ;;  %v173_v25 = vsel %vm172_vm10, %v1834_v52, %v169_v1  ;;  %v189_v38 = vmul.f32 %v2042_v59, %v188_v33  ;;  %vm202_vm9 = vmor %vm200_vm6, %vm201_vm8  ;;  %v418_v52 = vlaneseq  ;;  %v2194_v33 = vld [vmem:[%s3001_s1 + $0x70] sm:$0xff] }
  0x9a   :  { %v288_v27 = vmul.f32 %v173_v25, %v1964_v6  ;;  %v196_v34 = vmul.f32 %v1842_v16, %v195_v26  ;;  %v183_v6 = vsel %vm182_vm14, %v1836_v56, %v179_v30 }
  0x9b   :  { %v157_v31 = vmul.f32 0.5, %v156_v24  ;;  %v289_v37 = vmul.f32 %v183_v6, %v1969_v7  ;;  %v193_v42 = vsel %vm192_vm5, %v2042_v59, %v189_v38  ;;  %v2112_v53 = vand.u32 127, %v418_v52  ;;  %v2167_v24 = vld [vmem:[%s3001_s1 + $0x48] sm:$0xff] }
  0x9c   :  { %1774 = vmatmul.msk.f32.vlgmr.msra.gmra.mxu1 %vm59_vm0, %v288_v27  ;;  %v197_v0 = vmul.f32 0.5, %v196_v34  ;;  %v290_v43 = vmul.f32 %v193_v42, %v1977_v11  ;;  %v2176_v27 = vld [vmem:[%s3001_s1 + $0x40] sm:$0xff]  ;;  %v2221_v42 = vld [vmem:[%s3001_s1 + $0x50] sm:$0xff] }
  0x9d   :  { %1771 = vmatmul.msk.f32.gmra.mxu0 %vm59_vm0, %v285_v29  ;;  %v158_v35 = vsub.f32 1.5, %v157_v31  ;;  %v52_v29 = vmul.f32 %v2167_v24, %v2167_v24  ;;  %v51_v30 = vmul.f32 %v2176_v27, %v2176_v27 }
  0x9e   :  { %v198_v41 = vsub.f32 1.5, %v197_v0  ;;  %v57_v0 = vmul.f32 %v2194_v33, %v2194_v33 }
  0x9f   :  { %v159_v40 = vmul.f32 %v1840_v15, %v158_v35  ;;  %v87_v32 = vsel %vm59_vm0, %v52_v29, 0.0  ;;  %v84_v34 = vsel %vm59_vm0, %v51_v30, 0.0  ;;  %v2201_v35 = vld [vmem:[%s3001_s1 + $0x60] sm:$0xff] }
  0xa0   :  { %v199_v2 = vmul.f32 %v1842_v16, %v198_v41  ;;  %v102_v38 = vsel %vm59_vm0, %v57_v0, 0.0 }
  0xa1   :  { %v163_v7 = vsel %vm162_vm7, %v1840_v15, %v159_v40 }
  0xa2   :  { %v287_v44 = vmul.f32 %v163_v7, %v1990_v17  ;;  %v203_v45 = vsel %vm202_vm9, %v1842_v16, %v199_v2  ;;  %v53_v7 = vmul.f32 %v2221_v42, %v2221_v42  ;;  %v2228_v2 = vld [vmem:[%s3001_s1 + $0x58] sm:$0xff] }
  0xa3   :  { %v291_v46 = vmul.f32 %v203_v45, %v1996_v19 }
  0xa4   :  { %1775 = vmatmul.msk.f32.gmra.mxu1 %vm59_vm0, %v289_v37  ;;  %v55_v37 = vmul.f32 %v2201_v35, %v2201_v35 }
  0xa5   :  { %1772 = vmatmul.msk.f32.gmra.mxu0 %vm59_vm0, %v286_v39  ;;  %v56_v39 = vmul.f32 %v2206_v36, %v2206_v36 }
  0xa6   :  { %v96_v40 = vsel %vm59_vm0, %v55_v37, 0.0 }
  0xa7   :  { %v99_v41 = vsel %vm59_vm0, %v56_v39, 0.0 }
  0xac   :  { %1776 = vmatmul.msk.f32.gmra.mxu1 %vm59_vm0, %v290_v43  ;;  %v54_v43 = vmul.f32 %v2228_v2, %v2228_v2 }
  0xad   :  { %1773 = vmatmul.msk.f32.gmra.mxu0 %vm59_vm0, %v287_v44  ;;  %v90_v44 = vsel %vm59_vm0, %v53_v7, 0.0 }
  0xae   :  { %v93_v45 = vsel %vm59_vm0, %v54_v43, 0.0 }
  0xb4   :  { %1777 = vmatmul.msk.f32.gmra.mxu1 %vm59_vm0, %v291_v46  ;;  %v2237_v46 = vld [vmem:[%s3001_s1 + $0x78] sm:$0xff] }
 0x112   :  { %v2087_v47 = vpop.f32.mrf.mxu0 }
 0x113   :  { %420 = vmax.xlane.f32.xlu2 %v2087_v47 }
 0x119   :  { %v2090_v48 = vpop.f32.mrf.mxu1 }
 0x11a   :  { %v2092_v49 = vpop.f32.mrf.mxu0  ;;  %428 = vmax.xlane.f32.xlu0 %v2090_v48 }
 0x121   :  { %v2095_v11 = vpop.f32.mrf.mxu1 }
 0x122   :  { %v2097_v17 = vpop.f32.mrf.mxu0  ;;  %422 = vmax.xlane.f32.xlu0 %v2092_v49 }
 0x123   :  { %424 = vmax.xlane.f32.xlu1 %v2097_v17 }
 0x129   :  { %v2101_v19 = vpop.f32.mrf.mxu1 }
 0x12a   :  { %v2103_v50 = vpop.f32.mrf.mxu0 }
 0x12b   :  { %430 = vmax.xlane.f32.xlu1 %v2095_v11  ;;  %426 = vmax.xlane.f32.xlu2 %v2103_v50 }
 0x131   :  { %v2107_v51 = vpop.f32.mrf.mxu1 }
 0x132   :  { %3025 = vst [vmem:[#allocation11_spill] sm:$0xff] %v2107_v51  ;;  %434 = vmax.xlane.f32.xlu0 %v2107_v51 }
 0x133   :  { %432 = vmax.xlane.f32.xlu2 %v2101_v19 }
 0x186   :  { %v421_v54 = vpop.xlane.xlu2 %420 }
 0x187   :  { %vm452_vm10 = vcmp.ge.f32.partialorder %v2087_v47, %v421_v54  ;;  %v58_v54 = vmul.f32 %v2237_v46, %v2237_v46 }
 0x188   :  { %v2116_v55 = vsel %vm452_vm10, %v2112_v53, 128 }
 0x189   :  { %v485_v56 = vshra.s32 %v2116_v55, 16 }
 0x18b   :  { %v2119_v57 = vcvt.s32.f32 %v485_v56  ;;  %v105_v56 = vsel %vm59_vm0, %v58_v54, 0.0 }
 0x18d   :  { %488 = vmin.xlane.f32.xlu1 %v2119_v57  ;;  %v429_v58 = vpop.xlane.xlu0 %428 }
 0x18e   :  { %vm456_vm11 = vcmp.ge.f32.partialorder %v2090_v48, %v429_v58  ;;  %v484_v58 = vand.u32 65535, %v2116_v55 }
 0x18f   :  { %v2124_v59 = vsel %vm456_vm11, %v2112_v53, 128 }
 0x190   :  { %v541_v60 = vshra.s32 %v2124_v59, 16 }
 0x192   :  { %v2127_v61 = vcvt.s32.f32 %v541_v60 }
 0x194   :  { %544 = vmin.xlane.f32.xlu2 %v2127_v61 }
 0x195   :  { %v423_v62 = vpop.xlane.xlu0 %422 }
 0x196   :  { %v425_v63 = vpop.xlane.xlu1 %424  ;;  %vm453_vm12 = vcmp.ge.f32.partialorder %v2092_v49, %v423_v62  ;;  %v486_v62 = vcvt.s32.f32 %v484_v58 }
 0x197   :  { %v2132_v3 = vsel %vm453_vm12, %v2112_v53, 128  ;;  %vm454_vm14 = vcmp.ge.f32.partialorder %v2097_v17, %v425_v63 }
 0x198   :  { %v499_v4 = vshra.s32 %v2132_v3, 16  ;;  %v2147_v14 = vsel %vm454_vm14, %v2112_v53, 128  ;;  %v498_v55 = vand.u32 65535, %v2132_v3 }
 0x199   :  { %v513_v20 = vshra.s32 %v2147_v14, 16 }
 0x19a   :  { %v2135_v5 = vcvt.s32.f32 %v499_v4  ;;  %v540_v4 = vand.u32 65535, %v2124_v59 }
 0x19b   :  { %v2169_v25 = vcvt.s32.f32 %v513_v20 }
 0x19c   :  { %502 = vmin.xlane.f32.xlu2 %v2135_v5 }
 0x19e   :  { %v431_v8 = vpop.xlane.xlu1 %430  ;;  %v427_v9 = vpop.xlane.xlu2 %426 }
 0x19f   :  { %vm457_vm13 = vcmp.ge.f32.partialorder %v2095_v11, %v431_v8  ;;  %vm455_vm2 = vcmp.ge.f32.partialorder %v2103_v50, %v427_v9  ;;  %v542_v9 = vcvt.s32.f32 %v540_v4 }
 0x1a0   :  { %v2140_v10 = vsel %vm457_vm13, %v2112_v53, 128  ;;  %v2179_v28 = vsel %vm455_vm2, %v2112_v53, 128 }
 0x1a1   :  { %v555_v12 = vshra.s32 %v2140_v10, 16  ;;  %v527_v31 = vshra.s32 %v2179_v28, 16 }
 0x1a3   :  { %v2144_v13 = vcvt.s32.f32 %v555_v12  ;;  %v2196_v6 = vcvt.s32.f32 %v527_v31 }
 0x1a5   :  { %558 = vmin.xlane.f32.xlu0 %v2144_v13  ;;  %v435_v15 = vpop.xlane.xlu0 %434 }
 0x1a6   :  { %v433_v16 = vpop.xlane.xlu2 %432  ;;  %vm459_vm15 = vcmp.ge.f32.partialorder %v2107_v51, %v435_v15 }
 0x1a7   :  { %vm458_vm1 = vcmp.ge.f32.partialorder %v2101_v19, %v433_v16  ;;  %v2153_v18 = vsel %vm459_vm15, %v2112_v53, 128  ;;  %v500_v16 = vcvt.s32.f32 %v498_v55 }
 0x1a8   :  { %v2157_v21 = vsel %vm458_vm1, %v2112_v53, 128  ;;  %v583_v1 = vshra.s32 %v2153_v18, 16  ;;  %v582_v59 = vand.u32 65535, %v2153_v18  ;;  %v554_v18 = vand.u32 65535, %v2140_v10 }
 0x1a9   :  { %v569_v22 = vshra.s32 %v2157_v21, 16 }
 0x1aa   :  { %v2162_v23 = vcvt.s32.f32 %v583_v1  ;;  %v512_v1 = vand.u32 65535, %v2147_v14  ;;  %v526_v14 = vand.u32 65535, %v2179_v28  ;;  %v556_v0 = vcvt.s32.f32 %v554_v18 }
 0x1ab   :  { %v2171_v26 = vcvt.s32.f32 %v569_v22 }
 0x1ac   :  { %586 = vmin.xlane.f32.xlu2 %v2162_v23  ;;  %v514_v30 = vcvt.s32.f32 %v512_v1 }
 0x1ad   :  { %516 = vmin.xlane.f32.xlu0 %v2169_v25  ;;  %572 = vmin.xlane.f32.xlu1 %v2171_v26 }
 0x1b4   :  { %88 = vadd.xlane.f32.xlu2 %v87_v32 }
 0x1b5   :  { %530 = vmin.xlane.f32.xlu1 %v2196_v6  ;;  %85 = vadd.xlane.f32.xlu0 %v84_v34  ;;  %v528_v34 = vcvt.s32.f32 %v526_v14 }
 0x1bc   :  { %103 = vadd.xlane.f32.xlu2 %v102_v38 }
 0x1bd   :  { %97 = vadd.xlane.f32.xlu1 %v96_v40  ;;  %100 = vadd.xlane.f32.xlu0 %v99_v41 }
 0x1c5   :  { %91 = vadd.xlane.f32.xlu1 %v90_v44  ;;  %94 = vadd.xlane.f32.xlu0 %v93_v45 }
 0x1cd   :  { %106 = vadd.xlane.f32.xlu1 %v105_v56 }
 0x200   :  { %v2243_v60 = vpop.xlane.xlu1 %488 }
 0x201   :  { %vm490_vm3 = vcmp.eq.f32.partialorder %v2119_v57, %v2243_v60 }
 0x202   :  { %v491_v63 = vsel %vm490_vm3, %v486_v62, inf }
 0x203   :  { %492 = vmin.xlane.f32.xlu2 %v491_v63 }
 0x207   :  { %v2248_v8 = vpop.xlane.xlu2 %544 }
 0x208   :  { %vm546_vm4 = vcmp.eq.f32.partialorder %v2127_v61, %v2248_v8  ;;  %v584_v61 = vcvt.s32.f32 %v582_v59 }
 0x209   :  { %v547_v12 = vsel %vm546_vm4, %v542_v9, inf }
 0x20a   :  { %548 = vmin.xlane.f32.xlu0 %v547_v12 }
 0x20f   :  { %v2253_v15 = vpop.xlane.xlu2 %502 }
 0x210   :  { %vm504_vm5 = vcmp.eq.f32.partialorder %v2135_v5, %v2253_v15 }
 0x211   :  { %v505_v57 = vsel %vm504_vm5, %v500_v16, inf }
 0x212   :  { %506 = vmin.xlane.f32.xlu0 %v505_v57 }
 0x218   :  { %v2257_v20 = vpop.xlane.xlu0 %558 }
 0x219   :  { %vm560_vm8 = vcmp.eq.f32.partialorder %v2144_v13, %v2257_v20 }
 0x21a   :  { %v561_v37 = vsel %vm560_vm8, %v556_v0, inf }
 0x21f   :  { %v2261_v22 = vpop.xlane.xlu2 %586 }
 0x220   :  { %v2263_v29 = vpop.xlane.xlu1 %572  ;;  %v2265_v3 = vpop.xlane.xlu0 %516  ;;  %vm588_vm6 = vcmp.eq.f32.partialorder %v2162_v23, %v2261_v22 }
 0x221   :  { %v589_v5 = vsel %vm588_vm6, %v584_v61, inf  ;;  %vm518_vm7 = vcmp.eq.f32.partialorder %v2169_v25, %v2265_v3  ;;  %v568_v25 = vand.u32 65535, %v2157_v21  ;;  %vm574_vm10 = vcmp.eq.f32.partialorder %v2171_v26, %v2263_v29 }
 0x222   :  { %590 = vmin.xlane.f32.xlu0 %v589_v5  ;;  %v519_v31 = vsel %vm518_vm7, %v514_v30, inf }
 0x223   :  { %520 = vmin.xlane.f32.xlu1 %v519_v31  ;;  %v570_v10 = vcvt.s32.f32 %v568_v25 }
 0x225   :  { %v575_v28 = vsel %vm574_vm10, %v570_v10, inf }
 0x227   :  { %v89_v41 = vpop.xlane.xlu2 %88 }
 0x228   :  { %v2275_v32 = vpop.xlane.xlu1 %530  ;;  %v86_v13 = vpop.xlane.xlu0 %85  ;;  %v117_v7 = vmax.f32 %v89_v41, 1e-24 }
 0x229   :  { %vm532_vm9 = vcmp.eq.f32.partialorder %v2196_v6, %v2275_v32  ;;  %v116_v38 = vmax.f32 %v86_v13, 1e-24 }
 0x22a   :  { %v533_v23 = vsel %vm532_vm9, %v528_v34, inf  ;;  %vm220_vm2 = vweird.f32 %v117_v7 }
 0x22b   :  { %534 = vmin.xlane.f32.xlu2 %v533_v23  ;;  %562 = vmin.xlane.f32.xlu1 %v561_v37  ;;  %1843 = vrsqrt.f32 %v116_v38  ;;  %vm210_vm12 = vweird.f32 %v116_v38 }
 0x22f   :  { %v104_v26 = vpop.xlane.xlu2 %103 }
 0x230   :  { %v98_v39 = vpop.xlane.xlu1 %97  ;;  %v101_v6 = vpop.xlane.xlu0 %100  ;;  %v2282_v56 = vmax.f32 %v104_v26, 1e-24 }
 0x231   :  { %v120_v40 = vmax.f32 %v98_v39, 1e-24  ;;  %v121_v43 = vmax.f32 %v101_v6, 1e-24  ;;  %v1844_v44 = vpop.eup %1843 }
 0x232   :  { %v205_v54 = vmul.f32 %v1844_v44, %v116_v38  ;;  %vm211_vm13 = vweird.f32 %v1844_v44  ;;  %vm270_vm8 = vweird.f32 %v2282_v56 }
 0x233   :  { %576 = vmin.xlane.f32.xlu2 %v575_v28  ;;  %1845 = vrsqrt.f32 %v120_v40  ;;  %vm250_vm11 = vweird.f32 %v120_v40  ;;  %vm2291_vm15 = vmor %vm210_vm12, %vm211_vm13  ;;  %vm260_vm4 = vweird.f32 %v121_v43 }
 0x234   :  { %1847 = vrsqrt.f32 %v117_v7  ;;  %v206_v63 = vmul.f32 %v1844_v44, %v205_v54 }
 0x235   :  { %1849 = vrsqrt.f32 %v121_v43 }
 0x236   :  { %1851 = vrsqrt.f32 %v2282_v56  ;;  %v207_v55 = vmul.f32 0.5, %v206_v63 }
 0x238   :  { %v208_v61 = vsub.f32 1.5, %v207_v55  ;;  %v92_v31 = vpop.xlane.xlu1 %91  ;;  %v95_v23 = vpop.xlane.xlu0 %94 }
 0x239   :  { %v1846_v45 = vpop.eup %1845  ;;  %v118_v0 = vmax.f32 %v92_v31, 1e-24  ;;  %v2301_v25 = vmax.f32 %v95_v23, 1e-24 }
 0x23a   :  { %v245_v21 = vmul.f32 %v1846_v45, %v120_v40  ;;  %v2284_v58 = vpop.eup %1847  ;;  %vm251_vm14 = vweird.f32 %v1846_v45  ;;  %v209_v10 = vmul.f32 %v1844_v44, %v208_v61 }
 0x23b   :  { %v1850_v4 = vpop.eup %1849  ;;  %v215_v9 = vmul.f32 %v2284_v58, %v117_v7  ;;  %vm2295_vm1 = vmor %vm250_vm11, %vm251_vm14  ;;  %1853 = vrsqrt.f32 %v118_v0  ;;  %vm221_vm3 = vweird.f32 %v2284_v58  ;;  %vm230_vm10 = vweird.f32 %v118_v0 }
 0x23c   :  { %v246_v62 = vmul.f32 %v1846_v45, %v245_v21  ;;  %v255_v16 = vmul.f32 %v1850_v4, %v121_v43  ;;  %v2289_v59 = vpop.eup %1851  ;;  %1855 = vrsqrt.f32 %v2301_v25  ;;  %v213_v13 = vsel %vm2291_vm15, %v1844_v44, %v209_v10  ;;  %vm2314_vm6 = vmor %vm220_vm2, %vm221_vm3 }
 0x23d   :  { %v216_v57 = vmul.f32 %v2284_v58, %v215_v9  ;;  %v265_v34 = vmul.f32 %v2289_v59, %v2282_v56  ;;  %v292_v40 = vmul.f32 %v213_v13, %v2176_v27  ;;  %vm261_vm5 = vweird.f32 %v1850_v4 }
 0x23e   :  { %v247_v12 = vmul.f32 0.5, %v246_v62  ;;  %v256_v30 = vmul.f32 %v1850_v4, %v255_v16  ;;  %vm2318_vm7 = vmor %vm260_vm4, %vm261_vm5  ;;  %vm271_vm9 = vweird.f32 %v2289_v59  ;;  %vm240_vm14 = vweird.f32 %v2301_v25 }
 0x23f   :  { %v217_v18 = vmul.f32 0.5, %v216_v57  ;;  %v266_v38 = vmul.f32 %v2289_v59, %v265_v34  ;;  %1778 = vmatmul.msk.f32.vlgmr.msra.gmra.mxu2 %vm59_vm0, %v292_v40  ;;  %vm272_vm12 = vmor %vm270_vm8, %vm271_vm9 }
 0x240   :  { %v248_v1 = vsub.f32 1.5, %v247_v12  ;;  %v257_v37 = vmul.f32 0.5, %v256_v30  ;;  %v107_v44 = vpop.xlane.xlu1 %106 }
 0x241   :  { %v218_v6 = vsub.f32 1.5, %v217_v18  ;;  %v267_v27 = vmul.f32 0.5, %v266_v38 }
 0x242   :  { %v249_v28 = vmul.f32 %v1846_v45, %v248_v1  ;;  %v258_v21 = vsub.f32 1.5, %v257_v37 }
 0x243   :  { %v219_v43 = vmul.f32 %v2284_v58, %v218_v6  ;;  %v268_v57 = vsub.f32 1.5, %v267_v27 }
 0x244   :  { %v253_v39 = vsel %vm2295_vm1, %v1846_v45, %v249_v28  ;;  %v1854_v45 = vpop.eup %1853  ;;  %v259_v63 = vmul.f32 %v1850_v4, %v258_v21  ;;  %v2350_v21 = vld [vmem:[%s3003_s3] ss:$0 sm:$0xff] }
 0x245   :  { %v296_v41 = vmul.f32 %v253_v39, %v2201_v35  ;;  %v123_v35 = vmax.f32 %v107_v44, 1e-24  ;;  %v1856_v26 = vpop.eup %1855  ;;  %v225_v62 = vmul.f32 %v1854_v45, %v118_v0  ;;  %v223_v55 = vsel %vm2314_vm6, %v2284_v58, %v219_v43 }
 0x246   :  { %v235_v9 = vmul.f32 %v1856_v26, %v2301_v25  ;;  %v263_v16 = vsel %vm2318_vm7, %v1850_v4, %v259_v63  ;;  %v293_v1 = vmul.f32 %v223_v55, %v2167_v24  ;;  %vm231_vm11 = vweird.f32 %v1854_v45 }
 0x247   :  { %1782 = vmatmul.msk.f32.vlgmr.msra.gmra.mxu3 %vm59_vm0, %v296_v41  ;;  %1857 = vrsqrt.f32 %v123_v35  ;;  %v226_v12 = vmul.f32 %v1854_v45, %v225_v62  ;;  %v297_v61 = vmul.f32 %v263_v16, %v2206_v36  ;;  %vm232_vm13 = vmor %vm230_vm10, %vm231_vm11  ;;  %v269_v18 = vmul.f32 %v2289_v59, %v268_v57 }
 0x248   :  { %v236_v5 = vmul.f32 %v1856_v26, %v235_v9  ;;  %1779 = vmatmul.msk.f32.gmra.mxu2 %vm59_vm0, %v293_v1  ;;  %vm241_vm15 = vweird.f32 %v1856_v26  ;;  %vm280_vm1 = vweird.f32 %v123_v35  ;;  %v495_v25 = vcvt.f32.s32 %v2243_v60 }
 0x249   :  { %v227_v30 = vmul.f32 0.5, %v226_v12  ;;  %v273_v36 = vsel %vm272_vm12, %v2289_v59, %v269_v18  ;;  %vm242_vm3 = vmor %vm240_vm14, %vm241_vm15  ;;  %v551_v60 = vcvt.f32.s32 %v2248_v8  ;;  %v509_v43 = vcvt.f32.s32 %v2253_v15 }
 0x24a   :  { %v237_v4 = vmul.f32 0.5, %v236_v5  ;;  %v298_v23 = vmul.f32 %v273_v36, %v2194_v33  ;;  %v496_v41 = vshll.u32 %v495_v25, 16  ;;  %vm3015_vm15 = vcmask 523264  }
 0x24b   :  { %v228_v56 = vsub.f32 1.5, %v227_v30  ;;  %v552_v54 = vshll.u32 %v551_v60, 16  ;;  %v510_v55 = vshll.u32 %v509_v43, 16 }
 0x24c   :  { %v238_v37 = vsub.f32 1.5, %v237_v4  ;;  %v593_v4 = vcvt.f32.s32 %v2261_v22 }
 0x24d   :  { %v1858_v58 = vpop.eup %1857  ;;  %v229_v14 = vmul.f32 %v1854_v45, %v228_v56 }
 0x24e   :  { %v275_v31 = vmul.f32 %v1858_v58, %v123_v35  ;;  %vm281_vm2 = vweird.f32 %v1858_v58  ;;  %v239_v13 = vmul.f32 %v1856_v26, %v238_v37 }
 0x24f   :  { %1783 = vmatmul.msk.f32.gmra.mxu3 %vm59_vm0, %v297_v61  ;;  %v233_v34 = vsel %vm232_vm13, %v1854_v45, %v229_v14  ;;  %vm282_vm4 = vmor %vm280_vm1, %vm281_vm2 }
 0x250   :  { %v276_v24 = vmul.f32 %v1858_v58, %v275_v31  ;;  %v294_v0 = vmul.f32 %v233_v34, %v2221_v42  ;;  %v243_v39 = vsel %vm242_vm3, %v1856_v26, %v239_v13  ;;  %v523_v31 = vcvt.f32.s32 %v2265_v3 }
 0x251   :  { %v295_v42 = vmul.f32 %v243_v39, %v2228_v2  ;;  %v594_v34 = vshll.u32 %v593_v4, 16 }
 0x252   :  { %v277_v10 = vmul.f32 0.5, %v276_v24  ;;  %1780 = vmatmul.msk.f32.gmra.mxu2 %vm59_vm0, %v294_v0  ;;  %v524_v36 = vshll.u32 %v523_v31, 16 }
 0x254   :  { %v278_v28 = vsub.f32 1.5, %v277_v10  ;;  %v565_v10 = vcvt.f32.s32 %v2257_v20  ;;  %v537_v20 = vcvt.f32.s32 %v2275_v32 }
 0x256   :  { %v279_v59 = vmul.f32 %v1858_v58, %v278_v28  ;;  %v566_v3 = vshll.u32 %v565_v10, 16 }
 0x257   :  { %1784 = vmatmul.msk.f32.gmra.mxu3 %vm59_vm0, %v298_v23 }
 0x258   :  { %v283_v38 = vsel %vm282_vm4, %v1858_v58, %v279_v59 }
 0x259   :  { %v299_v33 = vmul.f32 %v283_v38, %v2237_v46 }
 0x25a   :  { %1781 = vmatmul.msk.f32.gmra.mxu2 %vm59_vm0, %v295_v42 }
 0x25f   :  { %1785 = vmatmul.msk.f32.gmra.mxu3 %vm59_vm0, %v299_v33  ;;  %v579_v33 = vcvt.f32.s32 %v2263_v29 }
 0x261   :  { %v580_v60 = vshll.u32 %v579_v33, 16 }
 0x276   :  { %v493_v40 = vpop.xlane.xlu2 %492 }
 0x277   :  { %v494_v6 = vcvt.f32.s32 %v493_v40 }
 0x279   :  { %v497_v7 = vadd.s32 %v496_v41, %v494_v6 }
 0x27b   :  { %vm708_vm5 = vcmp.eq.s32.totalorder %v2112_v53, %v497_v7 }
 0x27c   :  { %v725_v2 = vsel %vm708_vm5, %v2350_v21, 0 }
 0x27d   :  { %v549_v46 = vpop.xlane.xlu0 %548  ;;  %v741_v44 = vand.u32 65535, %v725_v2  ;;  %v742_v45 = vshrl.u32 %v725_v2, 16 }
 0x27e   :  { %v550_v27 = vcvt.f32.s32 %v549_v46  ;;  %v538_v46 = vshll.u32 %v537_v20, 16 }
 0x27f   :  { %v743_v35 = vcvt.s32.f32 %v741_v44  ;;  %v744_v26 = vcvt.s32.f32 %v742_v45 }
 0x280   :  { %v553_v62 = vadd.s32 %v552_v54, %v550_v27 }
 0x281   :  { %745 = vadd.xlane.f32.xlu0 %v743_v35  ;;  %747 = vadd.xlane.f32.xlu1 %v744_v26 }
 0x282   :  { %vm712_vm0 = vcmp.eq.s32.totalorder %v2112_v53, %v553_v62 }
 0x283   :  { %v729_v8 = vsel %vm712_vm0, %v2350_v21, 0 }
 0x284   :  { %v790_v63 = vshrl.u32 %v729_v8, 16  ;;  %v789_v9 = vand.u32 65535, %v729_v8 }
 0x285   :  { %v507_v12 = vpop.xlane.xlu0 %506 }
 0x286   :  { %v508_v16 = vcvt.f32.s32 %v507_v12  ;;  %v792_v57 = vcvt.s32.f32 %v790_v63  ;;  %v791_v1 = vcvt.s32.f32 %v789_v9 }
 0x288   :  { %v511_v61 = vadd.s32 %v510_v55, %v508_v16  ;;  %795 = vadd.xlane.f32.xlu2 %v792_v57 }
 0x289   :  { %793 = vadd.xlane.f32.xlu1 %v791_v1 }
 0x28a   :  { %vm709_vm6 = vcmp.eq.s32.totalorder %v2112_v53, %v511_v61 }
 0x28b   :  { %v726_v30 = vsel %vm709_vm6, %v2350_v21, 0 }
 0x28c   :  { %v754_v5 = vshrl.u32 %v726_v30, 16  ;;  %v753_v15 = vand.u32 65535, %v726_v30 }
 0x28e   :  { %v756_v56 = vcvt.s32.f32 %v754_v5  ;;  %v755_v58 = vcvt.s32.f32 %v753_v15 }
 0x290   :  { %759 = vadd.xlane.f32.xlu2 %v756_v56 }
 0x291   :  { %757 = vadd.xlane.f32.xlu1 %v755_v58 }
 0x295   :  { %v591_v14 = vpop.xlane.xlu0 %590 }
 0x296   :  { %v521_v18 = vpop.xlane.xlu1 %520  ;;  %v592_v24 = vcvt.f32.s32 %v591_v14 }
 0x297   :  { %v522_v0 = vcvt.f32.s32 %v521_v18 }
 0x298   :  { %v595_v37 = vadd.s32 %v594_v34, %v592_v24 }
 0x299   :  { %v525_v23 = vadd.s32 %v524_v36, %v522_v0  ;;  %v2376_v0 = vshrl.u32 %v418_v52, 7 }
 0x29a   :  { %vm715_vm8 = vcmp.eq.s32.totalorder %v2112_v53, %v595_v37 }
 0x29b   :  { %vm710_vm7 = vcmp.eq.s32.totalorder %v2112_v53, %v525_v23  ;;  %v732_v38 = vsel %vm715_vm8, %v2350_v21, 0  ;;  %vm942_vm1 = vcmp.eq.s32.totalorder %v2376_v0, %v2112_v53 }
 0x29c   :  { %v727_v28 = vsel %vm710_vm7, %v2350_v21, 0  ;;  %v826_v40 = vshrl.u32 %v732_v38, 16  ;;  %v825_v61 = vand.u32 65535, %v732_v38 }
 0x29d   :  { %v765_v13 = vand.u32 65535, %v727_v28  ;;  %v766_v29 = vshrl.u32 %v727_v28, 16  ;;  %v2379_v28 = vadd.s32 32, %v2376_v0 }
 0x29e   :  { %v535_v22 = vpop.xlane.xlu2 %534  ;;  %v563_v59 = vpop.xlane.xlu1 %562  ;;  %v828_v54 = vcvt.s32.f32 %v826_v40  ;;  %v827_v5 = vcvt.s32.f32 %v825_v61 }
 0x29f   :  { %v564_v25 = vcvt.f32.s32 %v563_v59  ;;  %v767_v39 = vcvt.s32.f32 %v765_v13  ;;  %v536_v6 = vcvt.f32.s32 %v535_v22  ;;  %v768_v43 = vcvt.s32.f32 %v766_v29 }
 0x2a0   :  { %v2382_v59 = vadd.s32 8, %v2376_v0  ;;  %vm946_vm12 = vcmp.eq.s32.totalorder %v2379_v28, %v2112_v53 }
 0x2a1   :  { %v567_v42 = vadd.s32 %v566_v3, %v564_v25  ;;  %769 = vadd.xlane.f32.xlu2 %v767_v39  ;;  %v539_v27 = vadd.s32 %v538_v46, %v536_v6 }
 0x2a2   :  { %vm943_vm13 = vcmp.eq.s32.totalorder %v2382_v59, %v2112_v53 }
 0x2a3   :  { %vm713_vm9 = vcmp.eq.s32.totalorder %v2112_v53, %v567_v42  ;;  %vm711_vm11 = vcmp.eq.s32.totalorder %v2112_v53, %v539_v27  ;;  %v2385_v42 = vadd.s32 40, %v2376_v0  ;;  %v2400_v27 = vadd.s32 16, %v2376_v0 }
 0x2a4   :  { %v730_v41 = vsel %vm713_vm9, %v2350_v21, 0  ;;  %v728_v9 = vsel %vm711_vm11, %v2350_v21, 0 }
 0x2a5   :  { %v802_v7 = vshrl.u32 %v730_v41, 16  ;;  %v801_v26 = vand.u32 65535, %v730_v41  ;;  %v777_v12 = vand.u32 65535, %v728_v9  ;;  %v778_v55 = vshrl.u32 %v728_v9, 16 }
 0x2a6   :  { %v577_v2 = vpop.xlane.xlu2 %576  ;;  %vm947_vm14 = vcmp.eq.s32.totalorder %v2385_v42, %v2112_v53  ;;  %vm3014_vm2 = vcmp.eq.s32.totalorder %v2400_v27, %v2112_v53 }
 0x2a7   :  { %v578_v44 = vcvt.f32.s32 %v577_v2  ;;  %v804_v45 = vcvt.s32.f32 %v802_v7  ;;  %v803_v63 = vcvt.s32.f32 %v801_v26  ;;  %v779_v16 = vcvt.s32.f32 %v777_v12 }
 0x2a8   :  { %v780_v57 = vcvt.s32.f32 %v778_v55 }
 0x2a9   :  { %v581_v35 = vadd.s32 %v580_v60, %v578_v44  ;;  %807 = vadd.xlane.f32.xlu0 %v804_v45  ;;  %831 = vadd.xlane.f32.xlu2 %v828_v54 }
 0x2ab   :  { %vm714_vm10 = vcmp.eq.s32.totalorder %v2112_v53, %v581_v35  ;;  %v2403_v35 = vadd.s32 24, %v2376_v0 }
 0x2ac   :  { %v731_v32 = vsel %vm714_vm10, %v2350_v21, 0 }
 0x2ad   :  { %v814_v62 = vshrl.u32 %v731_v32, 16  ;;  %v813_v1 = vand.u32 65535, %v731_v32  ;;  %vm3016_vm3 = vcmp.eq.s32.totalorder %v2403_v35, %v2112_v53 }
 0x2af   :  { %v816_v8 = vcvt.s32.f32 %v814_v62  ;;  %v815_v30 = vcvt.s32.f32 %v813_v1 }
 0x2b1   :  { %771 = vadd.xlane.f32.xlu0 %v768_v43  ;;  %819 = vadd.xlane.f32.xlu1 %v816_v8  ;;  %v2408_v8 = vadd.s32 56, %v2376_v0 }
 0x2b2   :  { %805 = vadd.xlane.f32.xlu2 %v803_v63  ;;  %v2411_v63 = vadd.s32 48, %v2376_v0 }
 0x2b3   :  { %vm3013_vm4 = vcmp.eq.s32.totalorder %v2408_v8, %v2112_v53 }
 0x2b4   :  { %vm3012_vm5 = vcmp.eq.s32.totalorder %v2411_v63, %v2112_v53 }
 0x2b9   :  { %781 = vadd.xlane.f32.xlu0 %v779_v16  ;;  %783 = vadd.xlane.f32.xlu1 %v780_v57 }
 0x2c1   :  { %817 = vadd.xlane.f32.xlu0 %v815_v30  ;;  %829 = vadd.xlane.f32.xlu1 %v827_v5 }
 0x2f4   :  { %v748_v56 = vpop.xlane.xlu1 %747  ;;  %v746_v21 = vpop.xlane.xlu0 %745 }
 0x2f5   :  { %v750_v22 = vcvt.f32.s32 %v748_v56  ;;  %v749_v7 = vcvt.f32.s32 %v746_v21 }
 0x2f7   :  { %v751_v6 = vshll.u32 %v750_v22, 16 }
 0x2f9   :  { %v2405_v43 = vadd.s32 %v751_v6, %v749_v7 }
 0x2fb   :  { %v796_v15 = vpop.xlane.xlu2 %795 }
 0x2fc   :  { %v794_v4 = vpop.xlane.xlu1 %793  ;;  %v798_v23 = vcvt.f32.s32 %v796_v15 }
 0x2fd   :  { %v797_v20 = vcvt.f32.s32 %v794_v4 }
 0x2fe   :  { %v799_v3 = vshll.u32 %v798_v23, 16 }
 0x300   :  { %v2391_v2 = vadd.s32 %v799_v3, %v797_v20 }
 0x302   :  { %v956_v16 = vsel %vm946_vm12, %v2391_v2, 0 }
 0x303   :  { %v760_v58 = vpop.xlane.xlu2 %759 }
 0x304   :  { %v758_v14 = vpop.xlane.xlu1 %757  ;;  %v762_v37 = vcvt.f32.s32 %v760_v58  ;;  %v952_v58 = vsel %vm942_vm1, %v2405_v43, 0 }
 0x305   :  { %v761_v60 = vcvt.f32.s32 %v758_v14 }
 0x306   :  { %v763_v38 = vshll.u32 %v762_v37, 16 }
 0x308   :  { %v2395_v54 = vadd.s32 %v763_v38, %v761_v60 }
 0x30a   :  { %v953_v57 = vsel %vm943_vm13, %v2395_v54, 0 }
 0x314   :  { %v770_v31 = vpop.xlane.xlu2 %769 }
 0x315   :  { %v773_v29 = vcvt.f32.s32 %v770_v31 }
 0x31c   :  { %v808_v18 = vpop.xlane.xlu0 %807  ;;  %v832_v24 = vpop.xlane.xlu2 %831 }
 0x31d   :  { %v810_v13 = vcvt.f32.s32 %v808_v18  ;;  %v834_v32 = vcvt.f32.s32 %v832_v24  ;;  %v965_v24 = vsel %vm3015_vm15, %v956_v16, 0 }
 0x31f   :  { %v811_v40 = vshll.u32 %v810_v13, 16  ;;  %v835_v30 = vshll.u32 %v834_v32, 16 }
 0x324   :  { %v820_v34 = vpop.xlane.xlu1 %819  ;;  %v772_v36 = vpop.xlane.xlu0 %771 }
 0x325   :  { %v806_v10 = vpop.xlane.xlu2 %805  ;;  %v774_v39 = vcvt.f32.s32 %v772_v36  ;;  %v822_v26 = vcvt.f32.s32 %v820_v34  ;;  %v962_v34 = vsel %vm3015_vm15, %v953_v57, 0  ;;  %v961_v36 = vsel %vm3015_vm15, %v952_v58, 0 }
 0x326   :  { %v809_v25 = vcvt.f32.s32 %v806_v10 }
 0x327   :  { %v775_v44 = vshll.u32 %v774_v39, 16  ;;  %v823_v5 = vshll.u32 %v822_v26, 16  ;;  %v966_v39 = vadd.s32 %v965_v24, %v961_v36 }
 0x328   :  { %v2393_v46 = vadd.s32 %v811_v40, %v809_v25 }
 0x329   :  { %v2419_v12 = vadd.s32 %v775_v44, %v773_v29  ;;  %v3006_v29 = vmov 0  }
 0x32a   :  { %v957_v9 = vsel %vm947_vm14, %v2393_v46, 0 }
 0x32b   :  { %v967_v4 = vsel %vm3015_vm15, %v957_v9, 0  ;;  %v954_v21 = vsel %vm3014_vm2, %v2419_v12, 0 }
 0x32c   :  { %v784_v52 = vpop.xlane.xlu1 %783  ;;  %v782_v33 = vpop.xlane.xlu0 %781  ;;  %v968_v23 = vadd.s32 %v967_v4, %v962_v34  ;;  %v963_v13 = vsel %vm3015_vm15, %v954_v21, 0 }
 0x32d   :  { %v786_v41 = vcvt.f32.s32 %v784_v52  ;;  %v785_v62 = vcvt.f32.s32 %v782_v33 }
 0x32e   :  { %v973_v33 = vadd.s32 %v968_v23, %v966_v39 }
 0x32f   :  { %v787_v45 = vshll.u32 %v786_v41, 16 }
 0x331   :  { %v2421_v55 = vadd.s32 %v787_v45, %v785_v62 }
 0x333   :  { %v955_v31 = vsel %vm3016_vm3, %v2421_v55, 0 }
 0x334   :  { %v830_v1 = vpop.xlane.xlu1 %829  ;;  %v818_v61 = vpop.xlane.xlu0 %817  ;;  %v964_v22 = vsel %vm3015_vm15, %v955_v31, 0 }
 0x335   :  { %v833_v15 = vcvt.f32.s32 %v830_v1  ;;  %v821_v56 = vcvt.f32.s32 %v818_v61 }
 0x337   :  { %v2452_v14 = vadd.s32 %v835_v30, %v833_v15  ;;  %v2454_v18 = vadd.s32 %v823_v5, %v821_v56 }
 0x339   :  { %v959_v37 = vsel %vm3013_vm4, %v2452_v14, 0  ;;  %v958_v10 = vsel %vm3012_vm5, %v2454_v18, 0 }
 0x33a   :  { %v971_v3 = vsel %vm3015_vm15, %v959_v37, 0  ;;  %v969_v25 = vsel %vm3015_vm15, %v958_v10, 0 }
 0x33b   :  { %v972_v38 = vadd.s32 %v971_v3, %v964_v22  ;;  %v970_v52 = vadd.s32 %v969_v25, %v963_v13 }
 0x33d   :  { %v974_v20 = vadd.s32 %v972_v38, %v970_v52 }
 0x33f   :  { %v975_v40 = vadd.s32 %v974_v20, %v973_v33 }
 0x341   :  { %v976_v41 = vrot.slane %v975_v40, 4 }
 0x343   :  { %v977_v6 = vadd.s32 %v976_v41, %v975_v40 }
 0x345   :  { %v978_v7 = vrot.slane %v977_v6, 2 }
 0x347   :  { %v979_v60 = vadd.s32 %v978_v7, %v977_v6  ;;  %v2495_v7 = vpop.f32.mrf.mxu2 }
 0x349   :  { %v980_v44 = vrot.slane %v979_v60, 1 }
 0x34b   :  { %v981_v45 = vadd.s32 %v980_v44, %v979_v60 }
 0x34d   :  { %vm984_vm0 = vcmp.eq.s32.totalorder %v2419_v12, %v981_v45  ;;  %vm983_vm6 = vcmp.eq.s32.totalorder %v2395_v54, %v981_v45  ;;  %vm982_vm7 = vcmp.eq.s32.totalorder %v2405_v43, %v981_v45  ;;  %vm987_vm8 = vcmp.eq.s32.totalorder %v2393_v46, %v981_v45 }
 0x34e   :  { %v992_v32 = vsel %vm984_vm0, 1, %v3006_v29  ;;  %v991_v26 = vsel %vm983_vm6, 1, %v3006_v29  ;;  %v990_v62 = vsel %vm982_vm7, 1, %v3006_v29  ;;  %v995_v5 = vsel %vm987_vm8, 1, %v3006_v29 }
 0x34f   :  { %v1024_v9 = vsel %vm3015_vm15, %v992_v32, 0  ;;  %v1011_v16 = vsel %vm3015_vm15, %v991_v26, 0  ;;  %v998_v57 = vsel %vm3015_vm15, %v990_v62, 0  ;;  %vm986_vm9 = vcmp.eq.s32.totalorder %v2391_v2, %v981_v45 }
 0x350   :  { %v1026_v1 = vshrl.u32 %v1024_v9, 16  ;;  %v1013_v61 = vshrl.u32 %v1011_v16, 16  ;;  %v1000_v30 = vshrl.u32 %v998_v57, 16  ;;  %vm985_vm10 = vcmp.eq.s32.totalorder %v2421_v55, %v981_v45 }
 0x351   :  { %v1063_v4 = vsel %vm3015_vm15, %v995_v5, 0  ;;  %v994_v21 = vsel %vm986_vm9, 1, %v3006_v29  ;;  %v993_v31 = vsel %vm985_vm10, 1, %v3006_v29  ;;  %vm989_vm11 = vcmp.eq.s32.totalorder %v2452_v14, %v981_v45 }
 0x352   :  { %v1028_v15 = vcvt.s32.f32 %v1026_v1  ;;  %v1015_v56 = vcvt.s32.f32 %v1013_v61  ;;  %v1002_v58 = vcvt.s32.f32 %v1000_v30  ;;  %v1050_v24 = vsel %vm3015_vm15, %v994_v21, 0  ;;  %v2497_v1 = vpop.f32.mrf.mxu3  ;;  %v2499_v30 = vpop.f32.mrf.mxu2 }
 0x353   :  { %v1037_v34 = vsel %vm3015_vm15, %v993_v31, 0  ;;  %v1065_v36 = vshrl.u32 %v1063_v4, 16  ;;  %v1052_v23 = vshrl.u32 %v1050_v24, 16  ;;  %vm988_vm0 = vcmp.eq.s32.totalorder %v2454_v18, %v981_v45  ;;  %3034 = vst [vmem:[#allocation12_spill] sm:$0xff] %v2497_v1 }
 0x354   :  { %1031 = vadd.xlane.f32.xlu1 %v1028_v15  ;;  %1018 = vadd.xlane.f32.xlu0 %v1015_v56  ;;  %v1039_v37 = vshrl.u32 %v1037_v34, 16  ;;  %v997_v10 = vsel %vm989_vm11, 1, %v3006_v29  ;;  %v996_v13 = vsel %vm988_vm0, 1, %v3006_v29  ;;  %v999_v33 = vand.u32 65535, %v998_v57 }
 0x355   :  { %1005 = vadd.xlane.f32.xlu2 %v1002_v58  ;;  %v1067_v22 = vcvt.s32.f32 %v1065_v36  ;;  %v1054_v3 = vcvt.s32.f32 %v1052_v23  ;;  %v1089_v39 = vsel %vm3015_vm15, %v997_v10, 0  ;;  %v1076_v38 = vsel %vm3015_vm15, %v996_v13, 0 }
 0x356   :  { %v1041_v25 = vcvt.s32.f32 %v1039_v37  ;;  %v1091_v52 = vshrl.u32 %v1089_v39, 16  ;;  %v1078_v20 = vshrl.u32 %v1076_v38, 16  ;;  %v1001_v41 = vcvt.s32.f32 %v999_v33 }
 0x357   :  { %v1025_v60 = vand.u32 65535, %v1024_v9  ;;  %v1038_v44 = vand.u32 65535, %v1037_v34  ;;  %v1012_v45 = vand.u32 65535, %v1011_v16  ;;  %v1064_v57 = vand.u32 65535, %v1063_v4 }
 0x358   :  { %v1093_v40 = vcvt.s32.f32 %v1091_v52  ;;  %v1080_v6 = vcvt.s32.f32 %v1078_v20  ;;  %v1077_v61 = vand.u32 65535, %v1076_v38  ;;  %v1051_v5 = vand.u32 65535, %v1050_v24 }
 0x359   :  { %v1027_v32 = vcvt.s32.f32 %v1025_v60  ;;  %v1040_v26 = vcvt.s32.f32 %v1038_v44  ;;  %v1014_v62 = vcvt.s32.f32 %v1012_v45  ;;  %v1066_v15 = vcvt.s32.f32 %v1064_v57 }
 0x35a   :  { %v1079_v56 = vcvt.s32.f32 %v1077_v61  ;;  %v1053_v58 = vcvt.s32.f32 %v1051_v5  ;;  %v2501_v9 = vpop.f32.mrf.mxu3  ;;  %v1090_v16 = vand.u32 65535, %v1089_v39  ;;  %v2503_v21 = vpop.f32.mrf.mxu2 }
 0x35b   :  { %3035 = vst [vmem:[#allocation13_spill] sm:$0xff] %v2501_v9 }
 0x35c   :  { %1070 = vadd.xlane.f32.xlu1 %v1067_v22  ;;  %1057 = vadd.xlane.f32.xlu0 %v1054_v3  ;;  %v1092_v31 = vcvt.s32.f32 %v1090_v16 }
 0x35d   :  { %1044 = vadd.xlane.f32.xlu2 %v1041_v25 }
 0x362   :  { %v2507_v4 = vpop.f32.mrf.mxu3  ;;  %v2509_v24 = vpop.f32.mrf.mxu2 }
 0x363   :  { %3036 = vst [vmem:[#allocation14_spill] sm:$0xff] %v2507_v4 }
 0x364   :  { %1096 = vadd.xlane.f32.xlu0 %v1093_v40  ;;  %1003 = vadd.xlane.f32.xlu1 %v1001_v41  ;;  %3037 = vst [vmem:[#allocation15_spill] sm:$0xff] %v2509_v24 }
 0x365   :  { %1083 = vadd.xlane.f32.xlu2 %v1080_v6 }
 0x36a   :  { %v2514_v34 = vpop.f32.mrf.mxu3 }
 0x36b   :  { %3038 = vst [vmem:[#allocation16_spill] sm:$0xff] %v2514_v34 }
 0x36c   :  { %1029 = vadd.xlane.f32.xlu0 %v1027_v32  ;;  %1042 = vadd.xlane.f32.xlu1 %v1040_v26 }
 0x36d   :  { %1016 = vadd.xlane.f32.xlu2 %v1014_v62 }
 0x374   :  { %1068 = vadd.xlane.f32.xlu0 %v1066_v15  ;;  %1081 = vadd.xlane.f32.xlu1 %v1079_v56 }
 0x375   :  { %1055 = vadd.xlane.f32.xlu2 %v1053_v58 }
 0x37c   :  { %436 = vmax.xlane.f32.xlu0 %v2495_v7  ;;  %438 = vmax.xlane.f32.xlu1 %v2499_v30 }
 0x37d   :  { %1094 = vadd.xlane.f32.xlu2 %v1092_v31 }
 0x384   :  { %442 = vmax.xlane.f32.xlu0 %v2509_v24  ;;  %444 = vmax.xlane.f32.xlu1 %v2497_v1 }
 0x385   :  { %440 = vmax.xlane.f32.xlu2 %v2503_v21 }
 0x38c   :  { %448 = vmax.xlane.f32.xlu0 %v2507_v4  ;;  %450 = vmax.xlane.f32.xlu1 %v2514_v34 }
 0x38d   :  { %446 = vmax.xlane.f32.xlu2 %v2501_v9 }
 0x3c7   :  { %v1032_v36 = vpop.xlane.xlu1 %1031  ;;  %v1019_v23 = vpop.xlane.xlu0 %1018 }
 0x3c8   :  { %v1006_v37 = vpop.xlane.xlu2 %1005  ;;  %v1021_v41 = vcvt.f32.s32 %v1019_v23  ;;  %v1034_v56 = vcvt.f32.s32 %v1032_v36 }
 0x3c9   :  { %v1008_v6 = vcvt.f32.s32 %v1006_v37 }
 0x3ca   :  { %v1022_v58 = vshll.u32 %v1021_v41, 16 }
 0x3cb   :  { %v1009_v16 = vshll.u32 %v1008_v6, 16 }
 0x3cf   :  { %v1071_v10 = vpop.xlane.xlu1 %1070  ;;  %v1058_v13 = vpop.xlane.xlu0 %1057 }
 0x3d0   :  { %v1045_v22 = vpop.xlane.xlu2 %1044  ;;  %v1073_v20 = vcvt.f32.s32 %v1071_v10  ;;  %v1060_v40 = vcvt.f32.s32 %v1058_v13 }
 0x3d1   :  { %v1047_v23 = vcvt.f32.s32 %v1045_v22 }
 0x3d2   :  { %v1074_v45 = vshll.u32 %v1073_v20, 16  ;;  %v1061_v32 = vshll.u32 %v1060_v40, 16 }
 0x3d3   :  { %v1048_v22 = vshll.u32 %v1047_v23, 16 }
 0x3d7   :  { %v1097_v3 = vpop.xlane.xlu0 %1096  ;;  %v1004_v25 = vpop.xlane.xlu1 %1003 }
 0x3d8   :  { %v1084_v39 = vpop.xlane.xlu2 %1083  ;;  %v1007_v61 = vcvt.f32.s32 %v1004_v25  ;;  %v1099_v37 = vcvt.f32.s32 %v1097_v3 }
 0x3d9   :  { %v1086_v57 = vcvt.f32.s32 %v1084_v39  ;;  %v1035_v39 = vshll.u32 %v1034_v56, 16 }
 0x3da   :  { %v2523_v51 = vadd.s32 %v1009_v16, %v1007_v61  ;;  %v1100_v3 = vshll.u32 %v1099_v37, 16 }
 0x3db   :  { %v1087_v13 = vshll.u32 %v1086_v57, 16 }
 0x3df   :  { %v1030_v38 = vpop.xlane.xlu0 %1029  ;;  %v1043_v52 = vpop.xlane.xlu1 %1042 }
 0x3e0   :  { %v1017_v33 = vpop.xlane.xlu2 %1016  ;;  %v1033_v20 = vcvt.f32.s32 %v1030_v38  ;;  %v1046_v25 = vcvt.f32.s32 %v1043_v52 }
 0x3e1   :  { %v1020_v5 = vcvt.f32.s32 %v1017_v33 }
 0x3e2   :  { %v2535_v38 = vadd.s32 %v1035_v39, %v1033_v20  ;;  %v2549_v57 = vadd.s32 %v1048_v22, %v1046_v25 }
 0x3e3   :  { %v2525_v40 = vadd.s32 %v1022_v58, %v1020_v5 }
 0x3e7   :  { %v1069_v60 = vpop.xlane.xlu0 %1068  ;;  %v1082_v44 = vpop.xlane.xlu1 %1081 }
 0x3e8   :  { %v1072_v26 = vcvt.f32.s32 %v1069_v60  ;;  %v1056_v62 = vpop.xlane.xlu2 %1055  ;;  %v1085_v10 = vcvt.f32.s32 %v1082_v44 }
 0x3e9   :  { %v1059_v15 = vcvt.f32.s32 %v1056_v62 }
 0x3ea   :  { %v2519_v31 = vadd.s32 %v1074_v45, %v1072_v26  ;;  %v2531_v36 = vadd.s32 %v1087_v13, %v1085_v10 }
 0x3eb   :  { %v2521_v29 = vadd.s32 %v1061_v32, %v1059_v15 }
 0x3ec   :  { %vm1104_vm6 = vcmp.gt.s32.totalorder %v2525_v40, %v2519_v31  ;;  %vm1106_vm10 = vcmp.gt.s32.totalorder %v2535_v38, %v2531_v36 }
 0x3ed   :  { %vm1102_vm7 = vcmp.gt.s32.totalorder %v2523_v51, %v2521_v29  ;;  %v1105_v45 = vsel %vm1104_vm6, %v2525_v40, %v2519_v31  ;;  %v1107_v56 = vsel %vm1106_vm10, %v2535_v38, %v2531_v36 }
 0x3ee   :  { %v1103_v32 = vsel %vm1102_vm7, %v2523_v51, %v2521_v29 }
 0x3ef   :  { %v437_v33 = vpop.xlane.xlu0 %436  ;;  %v439_v41 = vpop.xlane.xlu1 %438  ;;  %vm1110_vm11 = vcmp.gt.s32.totalorder %v1103_v32, %v1105_v45 }
 0x3f0   :  { %vm460_vm8 = vcmp.ge.f32.partialorder %v2495_v7, %v437_v33  ;;  %v1095_v6 = vpop.xlane.xlu2 %1094  ;;  %vm461_vm9 = vcmp.ge.f32.partialorder %v2499_v30, %v439_v41  ;;  %v1111_v37 = vsel %vm1110_vm11, %v1103_v32, %v1105_v45 }
 0x3f1   :  { %v2538_v52 = vsel %vm460_vm8, %v2112_v53, 128  ;;  %v1098_v60 = vcvt.f32.s32 %v1095_v6  ;;  %v2541_v44 = vsel %vm461_vm9, %v2112_v53, 128 }
 0x3f2   :  { %v597_v26 = vshra.s32 %v2538_v52, 16  ;;  %v611_v62 = vshra.s32 %v2541_v44, 16 }
 0x3f3   :  { %v2553_v61 = vadd.s32 %v1100_v3, %v1098_v60 }
 0x3f4   :  { %v2555_v5 = vcvt.s32.f32 %v597_v26  ;;  %v2557_v15 = vcvt.s32.f32 %v611_v62 }
 0x3f5   :  { %vm1108_vm0 = vcmp.gt.s32.totalorder %v2549_v57, %v2553_v61 }
 0x3f6   :  { %v1109_v58 = vsel %vm1108_vm0, %v2549_v57, %v2553_v61  ;;  %600 = vmin.xlane.f32.xlu2 %v2555_v5  ;;  %614 = vmin.xlane.f32.xlu0 %v2557_v15 }
 0x3f7   :  { %vm1112_vm6 = vcmp.gt.s32.totalorder %v1107_v56, %v1109_v58  ;;  %v443_v16 = vpop.xlane.xlu0 %442  ;;  %v445_v10 = vpop.xlane.xlu1 %444 }
 0x3f8   :  { %vm463_vm7 = vcmp.ge.f32.partialorder %v2509_v24, %v443_v16  ;;  %v441_v23 = vpop.xlane.xlu2 %440  ;;  %vm464_vm8 = vcmp.ge.f32.partialorder %v2497_v1, %v445_v10  ;;  %v1113_v13 = vsel %vm1112_vm6, %v1107_v56, %v1109_v58 }
 0x3f9   :  { %v2570_v20 = vsel %vm463_vm7, %v2112_v53, 128  ;;  %vm462_vm9 = vcmp.ge.f32.partialorder %v2503_v21, %v441_v23  ;;  %v2574_v39 = vsel %vm464_vm8, %v2112_v53, 128  ;;  %vm1114_vm10 = vcmp.gt.s32.totalorder %v1111_v37, %v1113_v13 }
 0x3fa   :  { %v2577_v25 = vsel %vm462_vm9, %v2112_v53, 128  ;;  %v639_v33 = vshra.s32 %v2570_v20, 16  ;;  %v653_v22 = vshra.s32 %v2574_v39, 16  ;;  %v1115_v3 = vsel %vm1114_vm10, %v1111_v37, %v1113_v13 }
 0x3fb   :  { %v625_v41 = vshra.s32 %v2577_v25, 16  ;;  %v1116_v60 = vrot.slane %v1115_v3, 4 }
 0x3fc   :  { %v2582_v6 = vcvt.s32.f32 %v639_v33  ;;  %v2586_v32 = vcvt.s32.f32 %v653_v22 }
 0x3fd   :  { %v2584_v45 = vcvt.s32.f32 %v625_v41  ;;  %vm1117_vm11 = vcmp.gt.s32.totalorder %v1115_v3, %v1116_v60 }
 0x3fe   :  { %642 = vmin.xlane.f32.xlu2 %v2582_v6  ;;  %656 = vmin.xlane.f32.xlu0 %v2586_v32  ;;  %v1118_v56 = vsel %vm1117_vm11, %v1115_v3, %v1116_v60 }
 0x3ff   :  { %628 = vmin.xlane.f32.xlu1 %v2584_v45  ;;  %v449_v26 = vpop.xlane.xlu0 %448  ;;  %v451_v62 = vpop.xlane.xlu1 %450  ;;  %v1119_v16 = vrot.slane %v1118_v56, 2 }
 0x400   :  { %vm466_vm0 = vcmp.ge.f32.partialorder %v2507_v4, %v449_v26  ;;  %v447_v58 = vpop.xlane.xlu2 %446  ;;  %vm467_vm6 = vcmp.ge.f32.partialorder %v2514_v34, %v451_v62 }
 0x401   :  { %v2594_v10 = vsel %vm466_vm0, %v2112_v53, 128  ;;  %vm465_vm7 = vcmp.ge.f32.partialorder %v2501_v9, %v447_v58  ;;  %v2598_v23 = vsel %vm467_vm6, %v2112_v53, 128  ;;  %vm1120_vm8 = vcmp.gt.s32.totalorder %v1118_v56, %v1119_v16 }
 0x402   :  { %v2601_v37 = vsel %vm465_vm7, %v2112_v53, 128  ;;  %v681_v13 = vshra.s32 %v2594_v10, 16  ;;  %v695_v41 = vshra.s32 %v2598_v23, 16  ;;  %v1121_v3 = vsel %vm1120_vm8, %v1118_v56, %v1119_v16 }
 0x403   :  { %v667_v33 = vshra.s32 %v2601_v37, 16  ;;  %v1122_v26 = vrot.slane %v1121_v3, 1 }
 0x404   :  { %v2606_v22 = vcvt.s32.f32 %v681_v13  ;;  %v2610_v62 = vcvt.s32.f32 %v695_v41 }
 0x405   :  { %v2608_v60 = vcvt.s32.f32 %v667_v33  ;;  %vm1123_vm9 = vcmp.gt.s32.totalorder %v1121_v3, %v1122_v26 }
 0x406   :  { %684 = vmin.xlane.f32.xlu2 %v2606_v22  ;;  %698 = vmin.xlane.f32.xlu0 %v2610_v62  ;;  %v1124_v58 = vsel %vm1123_vm9, %v1121_v3, %v1122_v26 }
 0x407   :  { %670 = vmin.xlane.f32.xlu1 %v2608_v60  ;;  %1801 = vpush %v1124_v58 }
 0x438   :  { %s1802_s10 = spop %1801 }
 0x439   :  { %v1126_v34 = vstv %s1802_s10 }
 0x43a   :  { %vm1127_vm10 = vcmp.eq.s32.totalorder %v2523_v51, %v1126_v34  ;;  %vm1128_vm11 = vcmp.eq.s32.totalorder %v2525_v40, %v1126_v34  ;;  %vm1129_vm0 = vcmp.eq.s32.totalorder %v2535_v38, %v1126_v34  ;;  %vm1130_vm6 = vcmp.eq.s32.totalorder %v2549_v57, %v1126_v34 }
 0x43b   :  { %vm1131_vm7 = vcmp.eq.s32.totalorder %v2521_v29, %v1126_v34  ;;  %vm1132_vm8 = vcmp.eq.s32.totalorder %v2519_v31, %v1126_v34  ;;  %vm1133_vm5 = vcmp.eq.s32.totalorder %v2531_v36, %v1126_v34  ;;  %vm1134_vm4 = vcmp.eq.s32.totalorder %v2553_v61, %v1126_v34 }
 0x43c   :  { %v1135_v56 = vsel %vm1127_vm10, %v2376_v0, 64  ;;  %v1136_v16 = vsel %vm1128_vm11, %v2382_v59, 64  ;;  %v1137_v51 = vsel %vm1129_vm0, %v2400_v27, 64  ;;  %v1138_v40 = vsel %vm1130_vm6, %v2403_v35, 64 }
 0x43d   :  { %v1139_v38 = vsel %vm1131_vm7, %v2379_v28, 64  ;;  %v1140_v57 = vsel %vm1132_vm8, %v2385_v42, 64  ;;  %v1141_v29 = vsel %vm1133_vm5, %v2411_v63, 64  ;;  %v1142_v31 = vsel %vm1134_vm4, %v2408_v8, 64 }
 0x43e   :  { %vm1143_vm9 = vcmp.lt.s32.totalorder %v1135_v56, %v1139_v38  ;;  %vm1145_vm2 = vcmp.lt.s32.totalorder %v1136_v16, %v1140_v57  ;;  %vm1147_vm15 = vcmp.lt.s32.totalorder %v1137_v51, %v1141_v29  ;;  %vm1149_vm3 = vcmp.lt.s32.totalorder %v1138_v40, %v1142_v31 }
 0x43f   :  { %v1144_v34 = vsel %vm1143_vm9, %v1135_v56, %v1139_v38  ;;  %v1146_v36 = vsel %vm1145_vm2, %v1136_v16, %v1140_v57  ;;  %v1148_v61 = vsel %vm1147_vm15, %v1137_v51, %v1141_v29  ;;  %v1150_v13 = vsel %vm1149_vm3, %v1138_v40, %v1142_v31 }
 0x440   :  { %vm1151_vm10 = vcmp.lt.s32.totalorder %v1144_v34, %v1146_v36  ;;  %vm1153_vm11 = vcmp.lt.s32.totalorder %v1148_v61, %v1150_v13  ;;  %v596_v56 = vand.u32 65535, %v2538_v52  ;;  %v610_v16 = vand.u32 65535, %v2541_v44 }
 0x441   :  { %v1152_v33 = vsel %vm1151_vm10, %v1144_v34, %v1146_v36  ;;  %v1154_v41 = vsel %vm1153_vm11, %v1148_v61, %v1150_v13  ;;  %v694_v61 = vand.u32 65535, %v2598_v23 }
 0x442   :  { %vm1155_vm0 = vcmp.lt.s32.totalorder %v1152_v33, %v1154_v41  ;;  %v598_v38 = vcvt.s32.f32 %v596_v56  ;;  %v612_v57 = vcvt.s32.f32 %v610_v16 }
 0x443   :  { %v1156_v3 = vsel %vm1155_vm0, %v1152_v33, %v1154_v41 }
 0x444   :  { %v1157_v26 = vrot.slane %v1156_v3, 4 }
 0x446   :  { %vm1158_vm6 = vcmp.lt.s32.totalorder %v1156_v3, %v1157_v26 }
 0x447   :  { %v1159_v58 = vsel %vm1158_vm6, %v1156_v3, %v1157_v26 }
 0x448   :  { %v1160_v4 = vrot.slane %v1159_v58, 2 }
 0x44a   :  { %vm1161_vm5 = vcmp.lt.s32.totalorder %v1159_v58, %v1160_v4 }
 0x44b   :  { %v1162_v9 = vsel %vm1161_vm5, %v1159_v58, %v1160_v4 }
 0x44c   :  { %v1163_v1 = vrot.slane %v1162_v9, 1 }
 0x44e   :  { %vm1164_vm4 = vcmp.lt.s32.totalorder %v1162_v9, %v1163_v1 }
 0x44f   :  { %v1165_v24 = vsel %vm1164_vm4, %v1162_v9, %v1163_v1  ;;  %v638_v1 = vand.u32 65535, %v2570_v20  ;;  %v652_v9 = vand.u32 65535, %v2574_v39 }
 0x450   :  { %1803 = vpush %v1165_v24  ;;  %v624_v24 = vand.u32 65535, %v2577_v25  ;;  %v680_v25 = vand.u32 65535, %v2594_v10 }
 0x451   :  { %v640_v44 = vcvt.s32.f32 %v638_v1 }
 0x452   :  { %v626_v20 = vcvt.s32.f32 %v624_v24  ;;  %v682_v33 = vcvt.s32.f32 %v680_v25 }
 0x469   :  { %v2633_v51 = vpop.xlane.xlu2 %600  ;;  %v2635_v40 = vpop.xlane.xlu0 %614 }
 0x46a   :  { %vm602_vm15 = vcmp.eq.f32.partialorder %v2555_v5, %v2633_v51  ;;  %vm616_vm2 = vcmp.eq.f32.partialorder %v2557_v15, %v2635_v40  ;;  %v654_v5 = vcvt.s32.f32 %v652_v9  ;;  %v607_v25 = vcvt.f32.s32 %v2633_v51  ;;  %v1859_v51 = vld [vmem:[%s3003_s3] ss:$0 sm:$0xff] }
 0x46b   :  { %v603_v4 = vsel %vm602_vm15, %v598_v38, inf  ;;  %v617_v29 = vsel %vm616_vm2, %v612_v57, inf }
 0x46c   :  { %604 = vmin.xlane.f32.xlu1 %v603_v4  ;;  %618 = vmin.xlane.f32.xlu2 %v617_v29 }
 0x471   :  { %v2644_v52 = vpop.xlane.xlu2 %642  ;;  %v2646_v31 = vpop.xlane.xlu0 %656 }
 0x472   :  { %v2648_v34 = vpop.xlane.xlu1 %628  ;;  %vm644_vm3 = vcmp.eq.f32.partialorder %v2582_v6, %v2644_v52  ;;  %vm658_vm7 = vcmp.eq.f32.partialorder %v2586_v32, %v2646_v31  ;;  %v666_v6 = vand.u32 65535, %v2601_v37 }
 0x473   :  { %v645_v15 = vsel %vm644_vm3, %v640_v44, inf  ;;  %v659_v39 = vsel %vm658_vm7, %v654_v5, inf  ;;  %vm630_vm8 = vcmp.eq.f32.partialorder %v2584_v45, %v2648_v34  ;;  %v696_v45 = vcvt.s32.f32 %v694_v61 }
 0x474   :  { %646 = vmin.xlane.f32.xlu1 %v645_v15  ;;  %660 = vmin.xlane.f32.xlu2 %v659_v39  ;;  %v631_v36 = vsel %vm630_vm8, %v626_v20, inf  ;;  %v668_v10 = vcvt.s32.f32 %v666_v6 }
 0x475   :  { %632 = vmin.xlane.f32.xlu0 %v631_v36  ;;  %v621_v36 = vcvt.f32.s32 %v2635_v40 }
 0x479   :  { %v2659_v13 = vpop.xlane.xlu2 %684  ;;  %v2661_v41 = vpop.xlane.xlu0 %698 }
 0x47a   :  { %v2663_v32 = vpop.xlane.xlu1 %670  ;;  %vm686_vm9 = vcmp.eq.f32.partialorder %v2606_v22, %v2659_v13  ;;  %vm700_vm10 = vcmp.eq.f32.partialorder %v2610_v62, %v2661_v41 }
 0x47b   :  { %v687_v3 = vsel %vm686_vm9, %v682_v33, inf  ;;  %v701_v23 = vsel %vm700_vm10, %v696_v45, inf  ;;  %vm672_vm11 = vcmp.eq.f32.partialorder %v2608_v60, %v2663_v32  ;;  %vm1255_vm9 = vcmask 1040384  }
 0x47c   :  { %688 = vmin.xlane.f32.xlu1 %v687_v3  ;;  %702 = vmin.xlane.f32.xlu2 %v701_v23  ;;  %v673_v37 = vsel %vm672_vm11, %v668_v10, inf  ;;  %v608_v33 = vshll.u32 %v607_v25, 16  ;;  %v622_v45 = vshll.u32 %v621_v36, 16 }
 0x47d   :  { %674 = vmin.xlane.f32.xlu0 %v673_v37 }
 0x481   :  { %s1804_s11 = spop %1803 }
 0x482   :  { %v1167_v26 = vstv %s1804_s11 }
 0x483   :  { %vm1168_vm0 = vcmp.eq.s32.totalorder %v2376_v0, %v1167_v26  ;;  %vm1169_vm6 = vcmp.eq.s32.totalorder %v2382_v59, %v1167_v26  ;;  %vm1170_vm5 = vcmp.eq.s32.totalorder %v2400_v27, %v1167_v26  ;;  %vm1171_vm4 = vcmp.eq.s32.totalorder %v2403_v35, %v1167_v26 }
 0x484   :  { %vm1172_vm15 = vcmp.eq.s32.totalorder %v2379_v28, %v1167_v26  ;;  %vm1173_vm2 = vcmp.eq.s32.totalorder %v2385_v42, %v1167_v26  ;;  %vm1174_vm3 = vcmp.eq.s32.totalorder %v2411_v63, %v1167_v26  ;;  %vm1175_vm7 = vcmp.eq.s32.totalorder %v2408_v8, %v1167_v26 }
 0x485   :  { %v1176_v22 = vsel %vm1168_vm0, %v2405_v43, 0  ;;  %v1177_v60 = vsel %vm1169_vm6, %v2395_v54, 0  ;;  %v1178_v62 = vsel %vm1170_vm5, %v2419_v12, 0  ;;  %v1179_v58 = vsel %vm1171_vm4, %v2421_v55, 0 }
 0x486   :  { %v1180_v56 = vsel %vm1172_vm15, %v2391_v2, 0  ;;  %v1181_v16 = vsel %vm1173_vm2, %v2393_v46, 0  ;;  %v1182_v38 = vsel %vm1174_vm3, %v2454_v18, 0  ;;  %v1183_v57 = vsel %vm1175_vm7, %v2452_v14, 0  ;;  %v2690_v2 = vld [vmem:[%s3003_s3] sm:$0x1] }
 0x487   :  { %v1184_v4 = vadd.s32 %v1180_v56, %v1176_v22  ;;  %v1185_v29 = vadd.s32 %v1181_v16, %v1177_v60  ;;  %v1186_v1 = vadd.s32 %v1182_v38, %v1178_v62  ;;  %v1187_v9 = vadd.s32 %v1183_v57, %v1179_v58 }
 0x488   :  { %v1200_v46 = vstv %s951_s12  ;;  %v1904_v14 = vmov 0.0   ;;  %v649_v26 = vcvt.f32.s32 %v2644_v52  ;;  %v663_v22 = vcvt.f32.s32 %v2646_v31 }
 0x489   :  { %v1188_v24 = vadd.s32 %v1185_v29, %v1184_v4  ;;  %v1189_v43 = vadd.s32 %v1187_v9, %v1186_v1  ;;  %vm1201_vm8 = vcmp.eq.s32.totalorder %v2690_v2, %v1200_v46  ;;  %v635_v62 = vcvt.f32.s32 %v2648_v34 }
 0x48a   :  { %v2694_v18 = vsel %vm1201_vm8, 1.0, %v1904_v14  ;;  %v650_v16 = vshll.u32 %v649_v26, 16  ;;  %v664_v29 = vshll.u32 %v663_v22, 16  ;;  %v691_v34 = vcvt.f32.s32 %v2659_v13 }
 0x48b   :  { %v1190_v44 = vadd.s32 %v1189_v43, %v1188_v24  ;;  %v1256_v39 = vsel %vm1255_vm9, %v2694_v18, 0.0  ;;  %v636_v24 = vshll.u32 %v635_v62, 16 }
 0x48c   :  { %1257 = vadd.xlane.f32.xlu0 %v1256_v39 }
 0x48d   :  { %v1191_v54 = vrot.slane %v1190_v44, 4 }
 0x48f   :  { %v1192_v5 = vadd.s32 %v1191_v54, %v1190_v44 }
 0x491   :  { %v1193_v12 = vrot.slane %v1192_v5, 2 }
 0x493   :  { %v1194_v15 = vadd.s32 %v1193_v12, %v1192_v5  ;;  %v705_v12 = vcvt.f32.s32 %v2661_v41 }
 0x495   :  { %v1195_v55 = vrot.slane %v1194_v15, 1 }
 0x497   :  { %v1196_v20 = vadd.s32 %v1195_v55, %v1194_v15  ;;  %v677_v55 = vcvt.f32.s32 %v2663_v32 }
 0x499   :  { %1805 = vpush %v1196_v20 }
 0x4ca   :  { %s1806_s15 = spop %1805 }
 0x4cb   :  { %1199 = sst [smem:[#allocation4]] %s1806_s15 }
 0x4df   :  { %v619_v61 = vpop.xlane.xlu2 %618  ;;  %v605_v6 = vpop.xlane.xlu1 %604 }
 0x4e0   :  { %v620_v3 = vcvt.f32.s32 %v619_v61  ;;  %v606_v10 = vcvt.f32.s32 %v605_v6  ;;  %v692_v61 = vshll.u32 %v691_v34, 16 }
 0x4e2   :  { %v623_v23 = vadd.s32 %v622_v45, %v620_v3  ;;  %v609_v37 = vadd.s32 %v608_v33, %v606_v10  ;;  %v706_v3 = vshll.u32 %v705_v12, 16 }
 0x4e4   :  { %vm717_vm10 = vcmp.eq.s32.totalorder %v2112_v53, %v623_v23  ;;  %vm716_vm11 = vcmp.eq.s32.totalorder %v2112_v53, %v609_v37  ;;  %v678_v37 = vshll.u32 %v677_v55, 16 }
 0x4e5   :  { %v2707_v40 = vsel %vm717_vm10, %v1859_v51, 0  ;;  %v2709_v60 = vsel %vm716_vm11, %v1859_v51, 0 }
 0x4e6   :  { %v850_v58 = vshrl.u32 %v2707_v40, 16  ;;  %v838_v52 = vshrl.u32 %v2709_v60, 16 }
 0x4e7   :  { %v647_v56 = vpop.xlane.xlu1 %646  ;;  %v661_v38 = vpop.xlane.xlu2 %660 }
 0x4e8   :  { %v648_v57 = vcvt.f32.s32 %v647_v56  ;;  %v852_v4 = vcvt.s32.f32 %v850_v58  ;;  %v840_v31 = vcvt.s32.f32 %v838_v52  ;;  %v662_v1 = vcvt.f32.s32 %v661_v38  ;;  %v633_v9 = vpop.xlane.xlu0 %632 }
 0x4e9   :  { %v634_v43 = vcvt.f32.s32 %v633_v9  ;;  %v849_v9 = vand.u32 65535, %v2707_v40  ;;  %v1205_v40 = vperm.slane %v2694_v18, 0 }
 0x4ea   :  { %v651_v44 = vadd.s32 %v650_v16, %v648_v57  ;;  %855 = vadd.xlane.f32.xlu2 %v852_v4  ;;  %843 = vadd.xlane.f32.xlu1 %v840_v31  ;;  %v665_v54 = vadd.s32 %v664_v29, %v662_v1 }
 0x4eb   :  { %v637_v5 = vadd.s32 %v636_v24, %v634_v43  ;;  %v837_v43 = vand.u32 65535, %v2709_v60 }
 0x4ec   :  { %vm719_vm0 = vcmp.eq.s32.totalorder %v2112_v53, %v651_v44  ;;  %vm720_vm6 = vcmp.eq.s32.totalorder %v2112_v53, %v665_v54  ;;  %v851_v44 = vcvt.s32.f32 %v849_v9 }
 0x4ed   :  { %v736_v15 = vsel %vm719_vm0, %v1859_v51, 0  ;;  %v737_v20 = vsel %vm720_vm6, %v1859_v51, 0  ;;  %vm718_vm5 = vcmp.eq.s32.totalorder %v2112_v53, %v637_v5  ;;  %v839_v34 = vcvt.s32.f32 %v837_v43 }
 0x4ee   :  { %v874_v46 = vshrl.u32 %v736_v15, 16  ;;  %v886_v25 = vshrl.u32 %v737_v20, 16  ;;  %v735_v36 = vsel %vm718_vm5, %v1859_v51, 0  ;;  %v885_v5 = vand.u32 65535, %v737_v20 }
 0x4ef   :  { %v689_v39 = vpop.xlane.xlu1 %688  ;;  %v703_v6 = vpop.xlane.xlu2 %702  ;;  %v862_v33 = vshrl.u32 %v735_v36, 16  ;;  %v861_v24 = vand.u32 65535, %v735_v36  ;;  %v873_v12 = vand.u32 65535, %v736_v15  ;;  %v1208_v20 = vmul.f32 %v1205_v40, %v2092_v49 }
 0x4f0   :  { %v690_v13 = vcvt.f32.s32 %v689_v39  ;;  %v876_v45 = vcvt.s32.f32 %v874_v46  ;;  %v704_v10 = vcvt.f32.s32 %v703_v6  ;;  %v675_v41 = vpop.xlane.xlu0 %674  ;;  %v888_v23 = vcvt.s32.f32 %v886_v25 }
 0x4f1   :  { %v676_v26 = vcvt.f32.s32 %v675_v41  ;;  %v864_v32 = vcvt.s32.f32 %v862_v33  ;;  %v863_v54 = vcvt.s32.f32 %v861_v24  ;;  %v887_v55 = vcvt.s32.f32 %v885_v5 }
 0x4f2   :  { %v693_v22 = vadd.s32 %v692_v61, %v690_v13  ;;  %879 = vadd.xlane.f32.xlu1 %v876_v45  ;;  %v707_v62 = vadd.s32 %v706_v3, %v704_v10  ;;  %891 = vadd.xlane.f32.xlu2 %v888_v23  ;;  %v875_v39 = vcvt.s32.f32 %v873_v12  ;;  %v1207_v61 = vmul.f32 %v1205_v40, %v2087_v47 }
 0x4f3   :  { %v679_v58 = vadd.s32 %v678_v37, %v676_v26  ;;  %867 = vadd.xlane.f32.xlu0 %v864_v32  ;;  %v1216_v13 = vsub.f32 %v2092_v49, %v1208_v20  ;;  %v1209_v33 = vmul.f32 %v1205_v40, %v2097_v17  ;;  %v1210_v45 = vmul.f32 %v1205_v40, %v2103_v50 }
 0x4f4   :  { %vm722_vm4 = vcmp.eq.s32.totalorder %v2112_v53, %v693_v22  ;;  %vm723_vm15 = vcmp.eq.s32.totalorder %v2112_v53, %v707_v62  ;;  %v1215_v15 = vsub.f32 %v2087_v47, %v1207_v61  ;;  %v1211_v41 = vmul.f32 %v1205_v40, %v2090_v48 }
 0x4f5   :  { %v739_v52 = vsel %vm722_vm4, %v1859_v51, 0  ;;  %v740_v56 = vsel %vm723_vm15, %v1859_v51, 0  ;;  %vm721_vm2 = vcmp.eq.s32.totalorder %v2112_v53, %v679_v58  ;;  %v1217_v18 = vsub.f32 %v2097_v17, %v1209_v33 }
 0x4f6   :  { %v910_v16 = vshrl.u32 %v739_v52, 16  ;;  %v922_v38 = vshrl.u32 %v740_v56, 16  ;;  %v738_v57 = vsel %vm721_vm2, %v1859_v51, 0  ;;  %v921_v25 = vand.u32 65535, %v740_v56 }
 0x4f7   :  { %v898_v4 = vshrl.u32 %v738_v57, 16  ;;  %v897_v51 = vand.u32 65535, %v738_v57  ;;  %v909_v36 = vand.u32 65535, %v739_v52  ;;  %v1219_v49 = vsub.f32 %v2090_v48, %v1211_v41  ;;  %v3039_v52 = vld [vmem:[#allocation11_spill] sm:$0xff] }
 0x4f8   :  { %v912_v31 = vcvt.s32.f32 %v910_v16  ;;  %v924_v29 = vcvt.s32.f32 %v922_v38  ;;  %v923_v60 = vcvt.s32.f32 %v921_v25  ;;  %v1218_v26 = vsub.f32 %v2103_v50, %v1210_v45 }
 0x4f9   :  { %v900_v1 = vcvt.s32.f32 %v898_v4  ;;  %v899_v46 = vcvt.s32.f32 %v897_v51  ;;  %v911_v6 = vcvt.s32.f32 %v909_v36  ;;  %v1212_v17 = vmul.f32 %v1205_v40, %v2095_v11 }
 0x4fa   :  { %915 = vadd.xlane.f32.xlu1 %v912_v31  ;;  %927 = vadd.xlane.f32.xlu2 %v924_v29  ;;  %v1213_v58 = vmul.f32 %v1205_v40, %v2101_v19  ;;  %v1214_v48 = vmul.f32 %v1205_v40, %v3039_v52  ;;  %vm3049_vm0 = vcmp.eq.s32.totalorder %v2411_v63, %v2112_v53 }
 0x4fb   :  { %903 = vadd.xlane.f32.xlu0 %v900_v1  ;;  %v1220_v62 = vsub.f32 %v2095_v11, %v1212_v17 }
 0x4fc   :  { %v1222_v56 = vsub.f32 %v3039_v52, %v1214_v48  ;;  %v1221_v50 = vsub.f32 %v2101_v19, %v1213_v58 }
 0x4ff   :  { %v1258_v3 = vpop.xlane.xlu0 %1257 }
 0x500   :  { %v1259_v10 = vrot.slane %v1258_v3, 4 }
 0x502   :  { %853 = vadd.xlane.f32.xlu1 %v851_v44  ;;  %865 = vadd.xlane.f32.xlu2 %v863_v54  ;;  %v1260_v23 = vadd.f32 %v1259_v10, %v1258_v3 }
 0x503   :  { %841 = vadd.xlane.f32.xlu0 %v839_v34 }
 0x504   :  { %v1261_v47 = vrot.slane %v1260_v23, 2 }
 0x506   :  { %v1262_v37 = vadd.f32 %v1261_v47, %v1260_v23 }
 0x508   :  { %v1263_v22 = vrot.slane %v1262_v37, 1 }
 0x50a   :  { %889 = vadd.xlane.f32.xlu1 %v887_v55  ;;  %901 = vadd.xlane.f32.xlu2 %v899_v46  ;;  %v1264_v32 = vadd.f32 %v1263_v22, %v1262_v37 }
 0x50b   :  { %877 = vadd.xlane.f32.xlu0 %v875_v39 }
 0x50c   :  { %1807 = vpush %v1264_v32 }
 0x512   :  { %925 = vadd.xlane.f32.xlu1 %v923_v60  ;;  %1223 = vmax.xlane.f32.xlu2 %v1207_v61 }
 0x513   :  { %913 = vadd.xlane.f32.xlu0 %v911_v6 }
 0x51a   :  { %1239 = vmax.xlane.f32.xlu1 %v1215_v15  ;;  %1241 = vmax.xlane.f32.xlu2 %v1216_v13 }
 0x51b   :  { %1225 = vmax.xlane.f32.xlu0 %v1208_v20 }
 0x522   :  { %1243 = vmax.xlane.f32.xlu1 %v1217_v18  ;;  %1229 = vmax.xlane.f32.xlu2 %v1210_v45 }
 0x523   :  { %1227 = vmax.xlane.f32.xlu0 %v1209_v33 }
 0x52a   :  { %1231 = vmax.xlane.f32.xlu1 %v1211_v41  ;;  %1247 = vmax.xlane.f32.xlu2 %v1219_v49 }
 0x52b   :  { %1245 = vmax.xlane.f32.xlu0 %v1218_v26 }
 0x532   :  { %1249 = vmax.xlane.f32.xlu1 %v1220_v62  ;;  %1235 = vmax.xlane.f32.xlu2 %v1213_v58 }
 0x533   :  { %1233 = vmax.xlane.f32.xlu0 %v1212_v17 }
 0x53a   :  { %1237 = vmax.xlane.f32.xlu1 %v1214_v48  ;;  %1253 = vmax.xlane.f32.xlu2 %v1222_v56 }
 0x53b   :  { %1251 = vmax.xlane.f32.xlu0 %v1221_v50 }
 0x53d   :  { %s1808_s3 = spop %1807 }
 0x53e   :  { %p1266_p0 = scmp.gt.f32.partialorder %s1808_s3, 0.0 }
 0x540   :  { %s1307_s18 = scalar_select %p1266_p0, 1, 0 }
 0x55d   :  { %v856_v16 = vpop.xlane.xlu2 %855  ;;  %v844_v38 = vpop.xlane.xlu1 %843 }
 0x55e   :  { %v858_v34 = vcvt.f32.s32 %v856_v16  ;;  %v846_v5 = vcvt.f32.s32 %v844_v38 }
 0x560   :  { %v859_v20 = vshll.u32 %v858_v34, 16  ;;  %v847_v15 = vshll.u32 %v846_v5, 16 }
 0x565   :  { %v880_v57 = vpop.xlane.xlu1 %879  ;;  %v892_v4 = vpop.xlane.xlu2 %891 }
 0x566   :  { %v868_v31 = vpop.xlane.xlu0 %867  ;;  %v894_v44 = vcvt.f32.s32 %v892_v4  ;;  %v882_v12 = vcvt.f32.s32 %v880_v57 }
 0x567   :  { %v870_v46 = vcvt.f32.s32 %v868_v31 }
 0x568   :  { %v895_v36 = vshll.u32 %v894_v44, 16  ;;  %v883_v33 = vshll.u32 %v882_v12, 16 }
 0x569   :  { %v871_v23 = vshll.u32 %v870_v46, 16 }
 0x56d   :  { %v916_v11 = vpop.xlane.xlu1 %915  ;;  %v928_v29 = vpop.xlane.xlu2 %927 }
 0x56e   :  { %v904_v1 = vpop.xlane.xlu0 %903  ;;  %v930_v13 = vcvt.f32.s32 %v928_v29  ;;  %v918_v10 = vcvt.f32.s32 %v916_v11 }
 0x56f   :  { %v906_v54 = vcvt.f32.s32 %v904_v1 }
 0x570   :  { %v931_v37 = vshll.u32 %v930_v13, 16  ;;  %v919_v58 = vshll.u32 %v918_v10, 16 }
 0x571   :  { %v907_v60 = vshll.u32 %v906_v54, 16 }
 0x575   :  { %v854_v9 = vpop.xlane.xlu1 %853  ;;  %v866_v24 = vpop.xlane.xlu2 %865 }
 0x576   :  { %v842_v43 = vpop.xlane.xlu0 %841  ;;  %v857_v39 = vcvt.f32.s32 %v854_v9  ;;  %v869_v18 = vcvt.f32.s32 %v866_v24 }
 0x577   :  { %v845_v61 = vcvt.f32.s32 %v842_v43 }
 0x578   :  { %v2746_v41 = vadd.s32 %v859_v20, %v857_v39  ;;  %v2752_v22 = vadd.s32 %v871_v23, %v869_v18 }
 0x579   :  { %v2748_v47 = vadd.s32 %v847_v15, %v845_v61 }
 0x57a   :  { %v1349_v52 = vsel %vm943_vm13, %v2746_v41, 0  ;;  %vm3043_vm13 = vcmp.eq.s32.totalorder %v2400_v27, %v2112_v53 }
 0x57b   :  { %v1348_v56 = vsel %vm942_vm1, %v2748_v47, 0  ;;  %v1350_v11 = vsel %vm3043_vm13, %v2752_v22, 0  ;;  %vm3044_vm1 = vcmp.eq.s32.totalorder %v2408_v8, %v2112_v53 }
 0x57d   :  { %v890_v51 = vpop.xlane.xlu1 %889  ;;  %v902_v19 = vpop.xlane.xlu2 %901 }
 0x57e   :  { %v893_v55 = vcvt.f32.s32 %v890_v51  ;;  %v905_v25 = vcvt.f32.s32 %v902_v19  ;;  %v878_v40 = vpop.xlane.xlu0 %877 }
 0x57f   :  { %v881_v6 = vcvt.f32.s32 %v878_v40 }
 0x580   :  { %v2742_v45 = vadd.s32 %v907_v60, %v905_v25  ;;  %v2744_v3 = vadd.s32 %v895_v36, %v893_v55 }
 0x581   :  { %v2750_v49 = vadd.s32 %v883_v33, %v881_v6 }
 0x582   :  { %v1353_v17 = vsel %vm947_vm14, %v2742_v45, 0  ;;  %v1352_v32 = vsel %vm946_vm12, %v2744_v3, 0  ;;  %vm3040_vm14 = vcmp.eq.s32.totalorder %v2403_v35, %v2112_v53  ;;  %vm3041_vm12 = vcmask 523264  }
 0x583   :  { %v1351_v50 = vsel %vm3040_vm14, %v2750_v49, 0  ;;  %v1362_v57 = vsel %vm3041_vm12, %v1353_v17, 0  ;;  %vm3042_vm3 = vmmov %vm3041_vm12 }
 0x584   :  { %v1360_v4 = vsel %vm3042_vm3, %v1352_v32, 0  ;;  %vm3045_vm7 = vmmov %vm3042_vm3 }
 0x585   :  { %v926_v26 = vpop.xlane.xlu1 %925  ;;  %v2778_v31 = vpop.xlane.xlu2 %1223  ;;  %v1356_v9 = vsel %vm3045_vm7, %v1348_v56, 0  ;;  %vm3046_vm8 = vmmov %vm3042_vm3 }
 0x586   :  { %v929_v62 = vcvt.f32.s32 %v926_v26  ;;  %v914_v48 = vpop.xlane.xlu0 %913  ;;  %v1357_v24 = vsel %vm3046_vm8, %v1349_v52, 0  ;;  %vm3047_vm10 = vmmov %vm3042_vm3  ;;  %v1361_v34 = vadd.s32 %v1360_v4, %v1356_v9 }
 0x587   :  { %v917_v16 = vcvt.f32.s32 %v914_v48  ;;  %v1359_v43 = vsel %vm3047_vm10, %v1351_v50, 0  ;;  %vm3048_vm11 = vmmov %vm3042_vm3  ;;  %v1363_v54 = vadd.s32 %v1362_v57, %v1357_v24 }
 0x588   :  { %v2774_v38 = vadd.s32 %v931_v37, %v929_v62  ;;  %vm3050_vm6 = vmmov %vm3042_vm3  ;;  %v3052_v37 = vmov 0  }
 0x589   :  { %v2784_v29 = vadd.s32 %v919_v58, %v917_v16  ;;  %v1358_v12 = vsel %vm3050_vm6, %v1350_v11, 0  ;;  %vm3051_vm5 = vmmov %vm3042_vm3  ;;  %v1368_v39 = vadd.s32 %v1363_v54, %v1361_v34 }
 0x58a   :  { %v1355_v1 = vsel %vm3044_vm1, %v2774_v38, 0  ;;  %vm3053_vm2 = vmmov %vm3042_vm3 }
 0x58b   :  { %v1366_v44 = vsel %vm3048_vm11, %v1355_v1, 0  ;;  %v1354_v5 = vsel %vm3049_vm0, %v2784_v29, 0  ;;  %vm3054_vm14 = vmmov %vm3053_vm2 }
 0x58c   :  { %v1367_v51 = vadd.s32 %v1366_v44, %v1359_v43  ;;  %v1364_v19 = vsel %vm3051_vm5, %v1354_v5, 0  ;;  %vm3055_vm13 = vmmov %vm3053_vm2 }
 0x58d   :  { %v1365_v55 = vadd.s32 %v1364_v19, %v1358_v12  ;;  %v2802_v36 = vpop.xlane.xlu2 %1241  ;;  %v1240_v60 = vpop.xlane.xlu1 %1239  ;;  %vm3056_vm1 = vmmov %vm3053_vm2 }
 0x58e   :  { %v2800_v46 = vpop.xlane.xlu0 %1225  ;;  %v1267_v54 = vsub.f32 %v1240_v60, %v2778_v31  ;;  %vm3057_vm11 = vmmov %vm3056_vm1 }
 0x58f   :  { %v1369_v25 = vadd.s32 %v1367_v51, %v1365_v55  ;;  %v1268_v51 = vsub.f32 %v2802_v36, %v2800_v46  ;;  %vm3058_vm0 = vmmov %vm3056_vm1 }
 0x590   :  { %vm3059_vm5 = vmmov %vm3058_vm0 }
 0x591   :  { %v1370_v40 = vadd.s32 %v1369_v25, %v1368_v39 }
 0x593   :  { %v1371_v61 = vrot.slane %v1370_v40, 4 }
 0x595   :  { %v1372_v6 = vadd.s32 %v1371_v61, %v1370_v40  ;;  %v2806_v33 = vpop.xlane.xlu2 %1229  ;;  %v2808_v18 = vpop.xlane.xlu1 %1243  ;;  %v1275_v61 = vadd.f32 0.1, %v1267_v54 }
 0x596   :  { %v2804_v20 = vpop.xlane.xlu0 %1227 }
 0x597   :  { %v1373_v53 = vrot.slane %v1372_v6, 2  ;;  %v1269_v25 = vsub.f32 %v2808_v18, %v2804_v20 }
 0x599   :  { %v1374_v15 = vadd.s32 %v1373_v53, %v1372_v6  ;;  %v1277_v20 = vadd.f32 0.1, %v1269_v25 }
 0x59b   :  { %v1375_v13 = vrot.slane %v1374_v15, 1 }
 0x59d   :  { %v1376_v10 = vadd.s32 %v1375_v13, %v1374_v15  ;;  %v2829_v11 = vpop.xlane.xlu2 %1247  ;;  %v2831_v1 = vpop.xlane.xlu1 %1231  ;;  %v1276_v15 = vadd.f32 0.1, %v1268_v51 }
 0x59e   :  { %v2811_v23 = vpop.xlane.xlu0 %1245 }
 0x59f   :  { %vm1379_vm4 = vcmp.eq.s32.totalorder %v2752_v22, %v1376_v10  ;;  %vm1378_vm15 = vcmp.eq.s32.totalorder %v2746_v41, %v1376_v10  ;;  %vm1377_vm12 = vcmp.eq.s32.totalorder %v2748_v47, %v1376_v10  ;;  %vm1382_vm3 = vcmp.eq.s32.totalorder %v2742_v45, %v1376_v10 }
 0x5a0   :  { %v1387_v26 = vsel %vm1379_vm4, 1, %v3052_v37  ;;  %v1386_v32 = vsel %vm1378_vm15, 1, %v3052_v37  ;;  %v1385_v48 = vsel %vm1377_vm12, 1, %v3052_v37  ;;  %v1390_v16 = vsel %vm1382_vm3, 1, %v3052_v37  ;;  %vm3060_vm4 = vmmov %vm3058_vm0 }
 0x5a1   :  { %v2816_v17 = vsel %vm3053_vm2, %v1387_v26, 0  ;;  %v2821_v58 = vsel %vm3054_vm14, %v1386_v32, 0  ;;  %v1393_v50 = vsel %vm3055_vm13, %v1385_v48, 0  ;;  %v2834_v9 = vsel %vm3056_vm1, %v1390_v16, 0 }
 0x5a2   :  { %v1421_v62 = vshrl.u32 %v2816_v17, 16  ;;  %v1408_v52 = vshrl.u32 %v2821_v58, 16  ;;  %v1395_v4 = vshrl.u32 %v1393_v50, 16  ;;  %vm1381_vm7 = vcmp.eq.s32.totalorder %v2744_v3, %v1376_v10 }
 0x5a3   :  { %v1460_v43 = vshrl.u32 %v2834_v9, 16  ;;  %v1389_v44 = vsel %vm1381_vm7, 1, %v3052_v37  ;;  %vm1380_vm8 = vcmp.eq.s32.totalorder %v2750_v49, %v1376_v10  ;;  %vm1384_vm10 = vcmp.eq.s32.totalorder %v2774_v38, %v1376_v10 }
 0x5a4   :  { %v1423_v56 = vcvt.s32.f32 %v1421_v62  ;;  %v1410_v57 = vcvt.s32.f32 %v1408_v52  ;;  %v1397_v24 = vcvt.s32.f32 %v1395_v4  ;;  %v2843_v34 = vsel %vm3057_vm11, %v1389_v44, 0 }
 0x5a5   :  { %v1388_v5 = vsel %vm1380_vm8, 1, %v3052_v37  ;;  %v1447_v19 = vshrl.u32 %v2843_v34, 16  ;;  %vm1383_vm6 = vcmp.eq.s32.totalorder %v2784_v29, %v1376_v10  ;;  %v1392_v39 = vsel %vm1384_vm10, 1, %v3052_v37  ;;  %v1236_v52 = vpop.xlane.xlu2 %1235  ;;  %v1250_v48 = vpop.xlane.xlu1 %1249 }
 0x5a6   :  { %1426 = vadd.xlane.f32.xlu2 %v1423_v56  ;;  %1413 = vadd.xlane.f32.xlu1 %v1410_v57  ;;  %v1234_v12 = vpop.xlane.xlu0 %1233  ;;  %v2850_v55 = vsel %vm3058_vm0, %v1388_v5, 0  ;;  %v1462_v40 = vcvt.s32.f32 %v1460_v43  ;;  %v1270_v46 = vsub.f32 %v2811_v23, %v2806_v33  ;;  %v1391_v53 = vsel %vm1383_vm6, 1, %v3052_v37 }
 0x5a7   :  { %1400 = vadd.xlane.f32.xlu0 %v1397_v24  ;;  %v1434_v31 = vshrl.u32 %v2850_v55, 16  ;;  %v1449_v6 = vcvt.s32.f32 %v1447_v19  ;;  %v2862_v13 = vsel %vm3059_vm5, %v1392_v39, 0  ;;  %v1308_v10 = vstv %s1307_s18 }
 0x5a8   :  { %v1291_v26 = vadd.f32 0.1, %v1240_v60  ;;  %v1292_v62 = vadd.f32 0.1, %v2802_v36  ;;  %v2866_v56 = vsel %vm3060_vm4, %v1391_v53, 0  ;;  %v1394_v33 = vand.u32 65535, %v1393_v50 }
 0x5a9   :  { %v1436_v32 = vcvt.s32.f32 %v1434_v31  ;;  %v1283_v16 = vmax.f32 %v1275_v61, 0.0  ;;  %v1278_v37 = vadd.f32 0.1, %v1270_v46  ;;  %v1486_v57 = vshrl.u32 %v2862_v13, 16 }
 0x5aa   :  { %vm2869_vm15 = vcmp.eq.s32.totalorder %v1308_v10, 1  ;;  %v1284_v60 = vmax.f32 %v1276_v15, 0.0  ;;  %v1293_v24 = vadd.f32 0.1, %v2808_v18  ;;  %vm1318_vm2 = vcmask 7168  }
 0x5ab   :  { %v1299_v36 = vmax.f32 %v1291_v26, 0.0  ;;  %v1294_v43 = vadd.f32 0.1, %v2811_v23  ;;  %v1473_v44 = vshrl.u32 %v2866_v56, 16  ;;  %v1300_v54 = vmax.f32 %v1292_v62, 0.0 }
 0x5ac   :  { %v1285_v50 = vmax.f32 %v1277_v20, 0.0  ;;  %v1271_v5 = vsub.f32 %v2829_v11, %v2831_v1  ;;  %v1396_v19 = vcvt.s32.f32 %v1394_v33  ;;  %v1286_v39 = vmax.f32 %v1278_v37, 0.0 }
 0x5ad   :  { %v1310_v31 = vsel %vm2869_vm15, %v1283_v16, %v1299_v36  ;;  %v1272_v25 = vsub.f32 %v1250_v48, %v1234_v12  ;;  %v1311_v18 = vsel %vm2869_vm15, %v1284_v60, %v1300_v54  ;;  %v1301_v61 = vmax.f32 %v1293_v24, 0.0  ;;  %v1238_v33 = vpop.xlane.xlu1 %1237 }
 0x5ae   :  { %1465 = vadd.xlane.f32.xlu2 %v1462_v40  ;;  %1452 = vadd.xlane.f32.xlu1 %v1449_v6  ;;  %v1252_v51 = vpop.xlane.xlu0 %1251  ;;  %v1488_v40 = vcvt.s32.f32 %v1486_v57  ;;  %v1302_v23 = vmax.f32 %v1294_v43, 0.0  ;;  %v1475_v6 = vcvt.s32.f32 %v1473_v44  ;;  %v1319_v53 = vsel %vm1318_vm2, %v1310_v31, 0.0 }
 0x5af   :  { %1439 = vadd.xlane.f32.xlu0 %v1436_v32  ;;  %v1273_v46 = vsub.f32 %v1252_v51, %v1236_v52  ;;  %v1312_v1 = vsel %vm2869_vm15, %v1285_v50, %v1301_v61  ;;  %v1279_v15 = vadd.f32 0.1, %v1271_v5  ;;  %v1433_v10 = vand.u32 65535, %v2850_v55  ;;  %v1254_v52 = vpop.xlane.xlu2 %1253 }
 0x5b0   :  { %v1320_v12 = vsel %vm1318_vm2, %v1311_v18, 0.0  ;;  %v1313_v26 = vsel %vm2869_vm15, %v1286_v39, %v1302_v23  ;;  %v1280_v32 = vadd.f32 0.1, %v1272_v25  ;;  %v1420_v62 = vand.u32 65535, %v2816_v17 }
 0x5b1   :  { %v1295_v20 = vadd.f32 0.1, %v2829_v11  ;;  %v1322_v16 = vsel %vm1318_vm2, %v1312_v1, 0.0  ;;  %v1296_v37 = vadd.f32 0.1, %v1250_v48  ;;  %v1407_v55 = vand.u32 65535, %v2821_v58 }
 0x5b2   :  { %v1281_v57 = vadd.f32 0.1, %v1273_v46  ;;  %v1321_v60 = vadd.f32 %v1320_v12, %v1319_v53  ;;  %v1324_v24 = vsel %vm1318_vm2, %v1313_v26, 0.0  ;;  %v1287_v36 = vmax.f32 %v1279_v15, 0.0 }
 0x5b3   :  { %v1435_v43 = vcvt.s32.f32 %v1433_v10  ;;  %v1288_v44 = vmax.f32 %v1280_v32, 0.0  ;;  %v1297_v54 = vadd.f32 0.1, %v1252_v51  ;;  %v1274_v17 = vsub.f32 %v1254_v52, %v1238_v33 }
 0x5b4   :  { %v1422_v50 = vcvt.s32.f32 %v1420_v62  ;;  %v1323_v11 = vadd.f32 %v1322_v16, %v1321_v60  ;;  %v1303_v5 = vmax.f32 %v1295_v20, 0.0  ;;  %v1289_v31 = vmax.f32 %v1281_v57, 0.0 }
 0x5b5   :  { %v1409_v48 = vcvt.s32.f32 %v1407_v55  ;;  %v1472_v25 = vand.u32 65535, %v2866_v56  ;;  %v1305_v51 = vmax.f32 %v1297_v54, 0.0  ;;  %v1282_v18 = vadd.f32 0.1, %v1274_v17  ;;  %v3064_v17 = vld [vmem:[#allocation12_spill] sm:$0xff] }
 0x5b6   :  { %1398 = vadd.xlane.f32.xlu2 %v1396_v19  ;;  %1491 = vadd.xlane.f32.xlu1 %v1488_v40  ;;  %v1304_v19 = vmax.f32 %v1296_v37, 0.0  ;;  %v1325_v39 = vadd.f32 %v1324_v24, %v1323_v11  ;;  %v1314_v58 = vsel %vm2869_vm15, %v1287_v36, %v1303_v5  ;;  %v1459_v61 = vand.u32 65535, %v2834_v9  ;;  %v3065_v11 = vld [vmem:[#allocation13_spill] sm:$0xff] }
 0x5b7   :  { %1478 = vadd.xlane.f32.xlu0 %v1475_v6  ;;  %v1298_v23 = vadd.f32 0.1, %v1254_v52  ;;  %v1446_v46 = vand.u32 65535, %v2843_v34  ;;  %v1595_v6 = vstv %s2891_s19  ;;  %v1316_v53 = vsel %vm2869_vm15, %v1289_v31, %v1305_v51 }
 0x5b8   :  { %v1315_v40 = vsel %vm2869_vm15, %v1288_v44, %v1304_v19  ;;  %v1326_v1 = vsel %vm1318_vm2, %v1314_v58, 0.0  ;;  %v1474_v15 = vcvt.s32.f32 %v1472_v25  ;;  %v1290_v10 = vmax.f32 %v1282_v18, 0.0  ;;  %v3063_v44 = vld [vmem:[#allocation15_spill] sm:$0xff] }
 0x5b9   :  { %v1328_v56 = vsel %vm1318_vm2, %v1315_v40, 0.0  ;;  %v1461_v12 = vcvt.s32.f32 %v1459_v61  ;;  %v1327_v26 = vadd.f32 %v1326_v1, %v1325_v39  ;;  %vm1596_vm14 = vcmp.eq.s32.totalorder %v2690_v2, %v1595_v6 }
 0x5ba   :  { %v1330_v9 = vsel %vm1318_vm2, %v1316_v53, 0.0  ;;  %v1306_v32 = vmax.f32 %v1298_v23, 0.0  ;;  %v1448_v34 = vcvt.s32.f32 %v1446_v46  ;;  %v1788_v20 = vsel %vm1596_vm14, 1.0, %v1904_v14 }
 0x5bb   :  { %v1329_v62 = vadd.f32 %v1328_v56, %v1327_v26  ;;  %v1485_v16 = vand.u32 65535, %v2862_v13  ;;  %v1650_v37 = vsel %vm1255_vm9, %v1788_v20, 0.0  ;;  %v1600_v57 = vperm.slane %v1788_v20, 0 }
 0x5bc   :  { %v1317_v52 = vsel %vm2869_vm15, %v1290_v10, %v1306_v32 }
 0x5bd   :  { %v1331_v33 = vadd.f32 %v1330_v9, %v1329_v62  ;;  %v1332_v2 = vsel %vm1318_vm2, %v1317_v52, 0.0  ;;  %v1487_v60 = vcvt.s32.f32 %v1485_v16  ;;  %v1602_v24 = vmul.f32 %v1600_v57, %v2495_v7 }
 0x5be   :  { %1437 = vadd.xlane.f32.xlu2 %v1435_v43  ;;  %1424 = vadd.xlane.f32.xlu1 %v1422_v50  ;;  %v1603_v4 = vmul.f32 %v1600_v57, %v2499_v30  ;;  %v1604_v13 = vmul.f32 %v1600_v57, %v2503_v21  ;;  %v1605_v54 = vmul.f32 %v1600_v57, %v3063_v44 }
 0x5bf   :  { %1411 = vadd.xlane.f32.xlu0 %v1409_v48  ;;  %v1333_v55 = vadd.f32 %v1332_v2, %v1331_v33  ;;  %v1610_v14 = vsub.f32 %v2495_v7, %v1602_v24  ;;  %v1606_v50 = vmul.f32 %v1600_v57, %v3064_v17  ;;  %v1607_v5 = vmul.f32 %v1600_v57, %v3065_v11  ;;  %v3067_v48 = vld [vmem:[#allocation16_spill] sm:$0xff] }
 0x5c0   :  { %v1612_v36 = vsub.f32 %v2503_v21, %v1604_v13  ;;  %v1611_v43 = vsub.f32 %v2499_v30, %v1603_v4  ;;  %v1613_v7 = vsub.f32 %v3063_v44, %v1605_v54  ;;  %v3066_v30 = vld [vmem:[#allocation14_spill] sm:$0xff]  ;;  %v1609_v39 = vmul.f32 %v1600_v57, %v3067_v48 }
 0x5c1   :  { %v1615_v19 = vsub.f32 %v3065_v11, %v1607_v5  ;;  %v1614_v21 = vsub.f32 %v3064_v17, %v1606_v50  ;;  %v1608_v31 = vmul.f32 %v1600_v57, %v3066_v30 }
 0x5c2   :  { %v1617_v25 = vsub.f32 %v3067_v48, %v1609_v39 }
 0x5c3   :  { %v1616_v58 = vsub.f32 %v3066_v30, %v1608_v31 }
 0x5c6   :  { %1476 = vadd.xlane.f32.xlu2 %v1474_v15  ;;  %1463 = vadd.xlane.f32.xlu1 %v1461_v12 }
 0x5c7   :  { %1450 = vadd.xlane.f32.xlu0 %v1448_v34 }
 0x5ce   :  { %1651 = vadd.xlane.f32.xlu2 %v1650_v37  ;;  %1334 = vadd.xlane.f32.xlu1 %v1333_v55 }
 0x5cf   :  { %1489 = vadd.xlane.f32.xlu0 %v1487_v60 }
 0x5d6   :  { %1634 = vmax.xlane.f32.xlu2 %v1610_v14  ;;  %1620 = vmax.xlane.f32.xlu1 %v1603_v4 }
 0x5d7   :  { %1618 = vmax.xlane.f32.xlu0 %v1602_v24 }
 0x5de   :  { %1638 = vmax.xlane.f32.xlu2 %v1612_v36  ;;  %1622 = vmax.xlane.f32.xlu1 %v1604_v13 }
 0x5df   :  { %1636 = vmax.xlane.f32.xlu0 %v1611_v43 }
 0x5e6   :  { %1626 = vmax.xlane.f32.xlu2 %v1606_v50  ;;  %1640 = vmax.xlane.f32.xlu1 %v1613_v7 }
 0x5e7   :  { %1624 = vmax.xlane.f32.xlu0 %v1605_v54 }
 0x5ee   :  { %1644 = vmax.xlane.f32.xlu2 %v1615_v19  ;;  %1628 = vmax.xlane.f32.xlu1 %v1607_v5 }
 0x5ef   :  { %1642 = vmax.xlane.f32.xlu0 %v1614_v21 }
 0x5f6   :  { %1632 = vmax.xlane.f32.xlu2 %v1609_v39  ;;  %1646 = vmax.xlane.f32.xlu1 %v1616_v58 }
 0x5f7   :  { %1630 = vmax.xlane.f32.xlu0 %v1608_v31 }
 0x5ff   :  { %1648 = vmax.xlane.f32.xlu0 %v1617_v25 }
 0x619   :  { %v1427_v40 = vpop.xlane.xlu2 %1426  ;;  %v1414_v51 = vpop.xlane.xlu1 %1413 }
 0x61a   :  { %v1401_v18 = vpop.xlane.xlu0 %1400  ;;  %v1416_v9 = vcvt.f32.s32 %v1414_v51  ;;  %v1429_v60 = vcvt.f32.s32 %v1427_v40 }
 0x61b   :  { %v1403_v34 = vcvt.f32.s32 %v1401_v18 }
 0x61c   :  { %v1417_v24 = vshll.u32 %v1416_v9, 16  ;;  %v1430_v11 = vshll.u32 %v1429_v60, 16 }
 0x61d   :  { %v1404_v14 = vshll.u32 %v1403_v34, 16 }
 0x621   :  { %v1466_v61 = vpop.xlane.xlu2 %1465  ;;  %v1453_v23 = vpop.xlane.xlu1 %1452 }
 0x622   :  { %v1440_v46 = vpop.xlane.xlu0 %1439  ;;  %v1468_v12 = vcvt.f32.s32 %v1466_v61  ;;  %v1455_v26 = vcvt.f32.s32 %v1453_v23 }
 0x623   :  { %v1442_v43 = vcvt.f32.s32 %v1440_v46 }
 0x624   :  { %v1469_v20 = vshll.u32 %v1468_v12, 16  ;;  %v1456_v52 = vshll.u32 %v1455_v26, 16 }
 0x625   :  { %v1443_v31 = vshll.u32 %v1442_v43, 16 }
 0x629   :  { %v1399_v6 = vpop.xlane.xlu2 %1398  ;;  %v1492_v53 = vpop.xlane.xlu1 %1491 }
 0x62a   :  { %v1479_v1 = vpop.xlane.xlu0 %1478  ;;  %v1402_v57 = vcvt.f32.s32 %v1399_v6  ;;  %v1494_v44 = vcvt.f32.s32 %v1492_v53 }
 0x62b   :  { %v1481_v37 = vcvt.f32.s32 %v1479_v1 }
 0x62c   :  { %v1405_v17 = vadd.s32 %v1404_v14, %v1402_v57  ;;  %v1495_v39 = vshll.u32 %v1494_v44, 16 }
 0x62d   :  { %v1482_v54 = vshll.u32 %v1481_v37, 16 }
 0x631   :  { %v1438_v15 = vpop.xlane.xlu2 %1437  ;;  %v1425_v56 = vpop.xlane.xlu1 %1424 }
 0x632   :  { %v1412_v10 = vpop.xlane.xlu0 %1411  ;;  %v1428_v7 = vcvt.f32.s32 %v1425_v56  ;;  %v1441_v5 = vcvt.f32.s32 %v1438_v15 }
 0x633   :  { %v1415_v2 = vcvt.f32.s32 %v1412_v10 }
 0x634   :  { %v1431_v58 = vadd.s32 %v1430_v11, %v1428_v7  ;;  %v1444_v61 = vadd.s32 %v1443_v31, %v1441_v5 }
 0x635   :  { %v1418_v50 = vadd.s32 %v1417_v24, %v1415_v2 }
 0x639   :  { %v1464_v32 = vpop.xlane.xlu1 %1463  ;;  %v1477_v16 = vpop.xlane.xlu2 %1476 }
 0x63a   :  { %v1467_v62 = vcvt.f32.s32 %v1464_v32  ;;  %v1451_v33 = vpop.xlane.xlu0 %1450  ;;  %v1480_v13 = vcvt.f32.s32 %v1477_v16 }
 0x63b   :  { %v1454_v55 = vcvt.f32.s32 %v1451_v33 }
 0x63c   :  { %v2934_v36 = vadd.s32 %v1469_v20, %v1467_v62  ;;  %v1483_v21 = vadd.s32 %v1482_v54, %v1480_v13 }
 0x63d   :  { %v2932_v4 = vadd.s32 %v1456_v52, %v1454_v55 }
 0x63e   :  { %vm1499_vm12 = vcmp.gt.s32.totalorder %v1418_v50, %v2934_v36  ;;  %vm1501_vm3 = vcmp.gt.s32.totalorder %v1431_v58, %v1483_v21 }
 0x63f   :  { %vm1497_vm9 = vcmp.gt.s32.totalorder %v1405_v17, %v2932_v4  ;;  %v1500_v18 = vsel %vm1499_vm12, %v1418_v50, %v2934_v36  ;;  %v1502_v53 = vsel %vm1501_vm3, %v1431_v58, %v1483_v21 }
 0x640   :  { %v1498_v51 = vsel %vm1497_vm9, %v1405_v17, %v2932_v4 }
 0x641   :  { %v1335_v19 = vpop.xlane.xlu1 %1334  ;;  %vm1505_vm13 = vcmp.gt.s32.totalorder %v1498_v51, %v1500_v18 }
 0x642   :  { %v1336_v30 = vrot.slane %v1335_v19, 4  ;;  %v1490_v48 = vpop.xlane.xlu0 %1489  ;;  %v1506_v56 = vsel %vm1505_vm13, %v1498_v51, %v1500_v18 }
 0x643   :  { %v1493_v25 = vcvt.f32.s32 %v1490_v48 }
 0x644   :  { %v1337_v40 = vadd.f32 %v1336_v30, %v1335_v19  ;;  %v1652_v30 = vpop.xlane.xlu2 %1651 }
 0x645   :  { %v1496_v23 = vadd.s32 %v1495_v39, %v1493_v25  ;;  %v1653_v31 = vrot.slane %v1652_v30, 4 }
 0x646   :  { %v1338_v46 = vrot.slane %v1337_v40, 2 }
 0x647   :  { %vm1503_vm1 = vcmp.gt.s32.totalorder %v1444_v61, %v1496_v23  ;;  %v1654_v51 = vadd.f32 %v1653_v31, %v1652_v30 }
 0x648   :  { %v1339_v6 = vadd.f32 %v1338_v46, %v1337_v40  ;;  %v1504_v1 = vsel %vm1503_vm1, %v1444_v61, %v1496_v23 }
 0x649   :  { %vm1507_vm7 = vcmp.gt.s32.totalorder %v1502_v53, %v1504_v1 }
 0x64a   :  { %v1340_v15 = vrot.slane %v1339_v6, 1  ;;  %v1508_v10 = vsel %vm1507_vm7, %v1502_v53, %v1504_v1  ;;  %v1621_v1 = vpop.xlane.xlu1 %1620 }
 0x64b   :  { %vm1509_vm8 = vcmp.gt.s32.totalorder %v1506_v56, %v1508_v10 }
 0x64c   :  { %v1341_v12 = vadd.f32 %v1340_v15, %v1339_v6  ;;  %v1510_v26 = vsel %vm1509_vm8, %v1506_v56, %v1508_v10  ;;  %v1635_v56 = vpop.xlane.xlu2 %1634 }
 0x64d   :  { %v1511_v9 = vrot.slane %v1510_v26, 4 }
 0x64e   :  { %1809 = vpush %v1341_v12 }
 0x64f   :  { %vm1512_vm10 = vcmp.gt.s32.totalorder %v1510_v26, %v1511_v9 }
 0x650   :  { %v1513_v32 = vsel %vm1512_vm10, %v1510_v26, %v1511_v9 }
 0x651   :  { %v1514_v34 = vrot.slane %v1513_v32, 2 }
 0x652   :  { %v1623_v10 = vpop.xlane.xlu1 %1622 }
 0x653   :  { %vm1515_vm11 = vcmp.gt.s32.totalorder %v1513_v32, %v1514_v34 }
 0x654   :  { %v1516_v62 = vsel %vm1515_vm11, %v1513_v32, %v1514_v34  ;;  %v1639_v26 = vpop.xlane.xlu2 %1638 }
 0x655   :  { %v1517_v20 = vrot.slane %v1516_v62, 1 }
 0x657   :  { %vm1518_vm0 = vcmp.gt.s32.totalorder %v1516_v62, %v1517_v20 }
 0x658   :  { %v1519_v52 = vsel %vm1518_vm0, %v1516_v62, %v1517_v20 }
 0x659   :  { %1811 = vpush %v1519_v52 }
 0x65a   :  { %v1641_v9 = vpop.xlane.xlu1 %1640 }
 0x65c   :  { %v1627_v34 = vpop.xlane.xlu2 %1626 }
 0x662   :  { %v1629_v62 = vpop.xlane.xlu1 %1628 }
 0x67f   :  { %s1810_s2 = spop %1809 }
 0x680   :  { %s1343_s20 = smul.f32 0.015625, %s1810_s2 }
 0x682   :  { %1345 = sst [smem:[#allocation6]] %s1343_s20 }
 0x68a   :  { %s1812_s21 = spop %1811 }
 0x68b   :  { %v1521_v33 = vstv %s1812_s21 }
 0x68c   :  { %vm1522_vm6 = vcmp.eq.s32.totalorder %v1405_v17, %v1521_v33  ;;  %vm1523_vm5 = vcmp.eq.s32.totalorder %v1418_v50, %v1521_v33  ;;  %vm1524_vm4 = vcmp.eq.s32.totalorder %v1431_v58, %v1521_v33  ;;  %vm1525_vm15 = vcmp.eq.s32.totalorder %v1444_v61, %v1521_v33 }
 0x68d   :  { %vm1526_vm14 = vcmp.eq.s32.totalorder %v2932_v4, %v1521_v33  ;;  %vm1527_vm9 = vcmp.eq.s32.totalorder %v2934_v36, %v1521_v33  ;;  %vm1528_vm12 = vcmp.eq.s32.totalorder %v1483_v21, %v1521_v33  ;;  %vm1529_vm3 = vcmp.eq.s32.totalorder %v1496_v23, %v1521_v33 }
 0x68e   :  { %v1530_v16 = vsel %vm1522_vm6, %v2376_v0, 64  ;;  %v1531_v37 = vsel %vm1523_vm5, %v2382_v59, 64  ;;  %v1532_v57 = vsel %vm1524_vm4, %v2400_v27, 64  ;;  %v1533_v2 = vsel %vm1525_vm15, %v2403_v35, 64 }
 0x68f   :  { %v1534_v55 = vsel %vm1526_vm14, %v2379_v28, 64  ;;  %v1535_v60 = vsel %vm1527_vm9, %v2385_v42, 64  ;;  %v1536_v24 = vsel %vm1528_vm12, %v2411_v63, 64  ;;  %v1537_v14 = vsel %vm1529_vm3, %v2408_v8, 64 }
 0x690   :  { %vm1538_vm13 = vcmp.lt.s32.totalorder %v1530_v16, %v1534_v55  ;;  %vm1540_vm1 = vcmp.lt.s32.totalorder %v1531_v37, %v1535_v60  ;;  %vm1542_vm7 = vcmp.lt.s32.totalorder %v1532_v57, %v1536_v24  ;;  %vm1544_vm8 = vcmp.lt.s32.totalorder %v1533_v2, %v1537_v14 }
 0x691   :  { %v1539_v4 = vsel %vm1538_vm13, %v1530_v16, %v1534_v55  ;;  %v1541_v13 = vsel %vm1540_vm1, %v1531_v37, %v1535_v60  ;;  %v1543_v36 = vsel %vm1542_vm7, %v1532_v57, %v1536_v24  ;;  %v1545_v43 = vsel %vm1544_vm8, %v1533_v2, %v1537_v14  ;;  %v1645_v16 = vpop.xlane.xlu2 %1644 }
 0x692   :  { %vm1546_vm10 = vcmp.lt.s32.totalorder %v1539_v4, %v1541_v13  ;;  %vm1548_vm11 = vcmp.lt.s32.totalorder %v1543_v36, %v1545_v43  ;;  %v1655_v61 = vrot.slane %v1654_v51, 2  ;;  %v1663_v37 = vsub.f32 %v1639_v26, %v1623_v10 }
 0x693   :  { %v1547_v44 = vsel %vm1546_vm10, %v1539_v4, %v1541_v13  ;;  %v1549_v54 = vsel %vm1548_vm11, %v1543_v36, %v1545_v43  ;;  %v1685_v57 = vadd.f32 0.1, %v1635_v56  ;;  %v1687_v4 = vadd.f32 0.1, %v1639_v26 }
 0x694   :  { %vm1550_vm0 = vcmp.lt.s32.totalorder %v1547_v44, %v1549_v54  ;;  %v1671_v13 = vadd.f32 0.1, %v1663_v37  ;;  %v1666_v43 = vsub.f32 %v1645_v16, %v1629_v62 }
 0x695   :  { %v1551_v17 = vsel %vm1550_vm0, %v1547_v44, %v1549_v54  ;;  %v1693_v36 = vmax.f32 %v1685_v57, 0.0  ;;  %v1647_v44 = vpop.xlane.xlu1 %1646  ;;  %v1695_v31 = vmax.f32 %v1687_v4, 0.0 }
 0x696   :  { %v1552_v50 = vrot.slane %v1551_v17, 4 }
 0x698   :  { %vm1553_vm6 = vcmp.lt.s32.totalorder %v1551_v17, %v1552_v50 }
 0x699   :  { %v1554_v7 = vsel %vm1553_vm6, %v1551_v17, %v1552_v50 }
 0x69a   :  { %v1555_v11 = vrot.slane %v1554_v7, 2 }
 0x69c   :  { %vm1556_vm5 = vcmp.lt.s32.totalorder %v1554_v7, %v1555_v11 }
 0x69d   :  { %v1557_v5 = vsel %vm1556_vm5, %v1554_v7, %v1555_v11  ;;  %v1688_v7 = vadd.f32 0.1, %v1641_v9 }
 0x69e   :  { %v1558_v19 = vrot.slane %v1557_v5, 1 }
 0x6a0   :  { %vm1559_vm4 = vcmp.lt.s32.totalorder %v1557_v5, %v1558_v19 }
 0x6a1   :  { %v1560_v21 = vsel %vm1559_vm4, %v1557_v5, %v1558_v19 }
 0x6a2   :  { %1813 = vpush %v1560_v21 }
 0x6d3   :  { %s1814_s22 = spop %1813 }
 0x6d4   :  { %v1562_v48 = vstv %s1814_s22 }
 0x6d5   :  { %vm1563_vm15 = vcmp.eq.s32.totalorder %v2376_v0, %v1562_v48  ;;  %vm1564_vm14 = vcmp.eq.s32.totalorder %v2382_v59, %v1562_v48  ;;  %vm1565_vm9 = vcmp.eq.s32.totalorder %v2400_v27, %v1562_v48  ;;  %vm1566_vm12 = vcmp.eq.s32.totalorder %v2403_v35, %v1562_v48 }
 0x6d6   :  { %vm1567_vm3 = vcmp.eq.s32.totalorder %v2379_v28, %v1562_v48  ;;  %vm1568_vm13 = vcmp.eq.s32.totalorder %v2385_v42, %v1562_v48  ;;  %vm1569_vm1 = vcmp.eq.s32.totalorder %v2411_v63, %v1562_v48  ;;  %vm1570_vm7 = vcmp.eq.s32.totalorder %v2408_v8, %v1562_v48 }
 0x6d7   :  { %v1571_v39 = vsel %vm1563_vm15, %v2748_v47, 0  ;;  %v1572_v58 = vsel %vm1564_vm14, %v2746_v41, 0  ;;  %v1573_v0 = vsel %vm1565_vm9, %v2752_v22, 0  ;;  %v1574_v59 = vsel %vm1566_vm12, %v2750_v49, 0 }
 0x6d8   :  { %v1575_v27 = vsel %vm1567_vm3, %v2744_v3, 0  ;;  %v1576_v35 = vsel %vm1568_vm13, %v2742_v45, 0  ;;  %v1577_v28 = vsel %vm1569_vm1, %v2784_v29, 0  ;;  %v1578_v42 = vsel %vm1570_vm7, %v2774_v38, 0  ;;  %v1619_v38 = vpop.xlane.xlu0 %1618 }
 0x6d9   :  { %v1579_v25 = vadd.s32 %v1575_v27, %v1571_v39  ;;  %v1580_v63 = vadd.s32 %v1576_v35, %v1572_v58  ;;  %v1581_v40 = vadd.s32 %v1577_v28, %v1573_v0  ;;  %v1582_v8 = vadd.s32 %v1578_v42, %v1574_v59  ;;  %v1633_v27 = vpop.xlane.xlu2 %1632 }
 0x6da   :  { %v1656_v49 = vadd.f32 %v1655_v61, %v1654_v51  ;;  %v1661_v52 = vsub.f32 %v1635_v56, %v1619_v38  ;;  %v1679_v48 = vmax.f32 %v1671_v13, 0.0  ;;  %v1690_v0 = vadd.f32 0.1, %v1645_v16 }
 0x6db   :  { %v1583_v47 = vadd.s32 %v1580_v63, %v1579_v25  ;;  %v1584_v18 = vadd.s32 %v1582_v8, %v1581_v40  ;;  %v1674_v59 = vadd.f32 0.1, %v1666_v43  ;;  %v1696_v25 = vmax.f32 %v1688_v7, 0.0 }
 0x6dc   :  { %v1657_v6 = vrot.slane %v1656_v49, 1  ;;  %v1669_v2 = vadd.f32 0.1, %v1661_v52  ;;  %v1691_v61 = vadd.f32 0.1, %v1647_v44 }
 0x6dd   :  { %v1585_v41 = vadd.s32 %v1584_v18, %v1583_v47 }
 0x6de   :  { %v1658_v29 = vadd.f32 %v1657_v6, %v1656_v49  ;;  %v1677_v54 = vmax.f32 %v1669_v2, 0.0  ;;  %v1698_v49 = vmax.f32 %v1690_v0, 0.0 }
 0x6df   :  { %v1586_v22 = vrot.slane %v1585_v41, 4 }
 0x6e0   :  { %v1637_v15 = vpop.xlane.xlu0 %1636 }
 0x6e1   :  { %v1587_v23 = vadd.s32 %v1586_v22, %v1585_v41  ;;  %v1662_v33 = vsub.f32 %v1637_v15, %v1621_v1  ;;  %v1686_v55 = vadd.f32 0.1, %v1637_v15  ;;  %v1699_v15 = vmax.f32 %v1691_v61, 0.0 }
 0x6e3   :  { %v1588_v46 = vrot.slane %v1587_v23, 2  ;;  %v1670_v24 = vadd.f32 0.1, %v1662_v33  ;;  %v1694_v17 = vmax.f32 %v1686_v55, 0.0 }
 0x6e5   :  { %v1589_v3 = vadd.s32 %v1588_v46, %v1587_v23  ;;  %v1678_v11 = vmax.f32 %v1670_v24, 0.0  ;;  %v1682_v46 = vmax.f32 %v1674_v59, 0.0 }
 0x6e7   :  { %v1590_v45 = vrot.slane %v1589_v3, 1 }
 0x6e8   :  { %v1625_v12 = vpop.xlane.xlu0 %1624 }
 0x6e9   :  { %v1591_v53 = vadd.s32 %v1590_v45, %v1589_v3  ;;  %v1664_v60 = vsub.f32 %v1641_v9, %v1625_v12 }
 0x6eb   :  { %1815 = vpush %v1591_v53  ;;  %v1672_v50 = vadd.f32 0.1, %v1664_v60 }
 0x6ec   :  { %1817 = vpush %v1658_v29 }
 0x6ed   :  { %v1680_v42 = vmax.f32 %v1672_v50, 0.0 }
 0x6f0   :  { %v1643_v32 = vpop.xlane.xlu0 %1642 }
 0x6f1   :  { %v1665_v14 = vsub.f32 %v1643_v32, %v1627_v34  ;;  %v1689_v19 = vadd.f32 0.1, %v1643_v32 }
 0x6f3   :  { %v1673_v5 = vadd.f32 0.1, %v1665_v14  ;;  %v1697_v51 = vmax.f32 %v1689_v19, 0.0 }
 0x6f5   :  { %v1681_v8 = vmax.f32 %v1673_v5, 0.0 }
 0x6f8   :  { %v1631_v20 = vpop.xlane.xlu0 %1630 }
 0x6f9   :  { %v1667_v39 = vsub.f32 %v1647_v44, %v1631_v20 }
 0x6fb   :  { %v1675_v41 = vadd.f32 0.1, %v1667_v39 }
 0x6fd   :  { %v1683_v1 = vmax.f32 %v1675_v41, 0.0 }
 0x700   :  { %v1649_v21 = vpop.xlane.xlu0 %1648 }
 0x701   :  { %v1668_v63 = vsub.f32 %v1649_v21, %v1633_v27  ;;  %v1692_v45 = vadd.f32 0.1, %v1649_v21 }
 0x703   :  { %v1676_v6 = vadd.f32 0.1, %v1668_v63  ;;  %v1700_v9 = vmax.f32 %v1692_v45, 0.0 }
 0x705   :  { %v1684_v26 = vmax.f32 %v1676_v6, 0.0 }
 0x71c   :  { %s1816_s23 = spop %1815 }
 0x71d   :  { %1594 = sst [smem:[#allocation4 + $0x1]] %s1816_s23  ;;  %s1818_s24 = spop %1817 }
 0x71e   :  { %p1660_p1 = scmp.gt.f32.partialorder %s1818_s24, 0.0 }
 0x71f   :  { %1747 = dma.smem_to_hbm %s1905_s28, 16, %s1745_s27, [#allocation5]  }
 0x720   :  { %s1701_s25 = scalar_select %p1660_p1, 1, 0 }
 0x722   :  { %v1702_v30 = vstv %s1701_s25 }
 0x723   :  { %vm2966_vm8 = vcmp.eq.s32.totalorder %v1702_v30, 1 }
 0x724   :  { %v1704_v35 = vsel %vm2966_vm8, %v1677_v54, %v1693_v36  ;;  %v1705_v28 = vsel %vm2966_vm8, %v1678_v11, %v1694_v17  ;;  %v1706_v40 = vsel %vm2966_vm8, %v1679_v48, %v1695_v31  ;;  %v1707_v22 = vsel %vm2966_vm8, %v1680_v42, %v1696_v25 }
 0x725   :  { %v1712_v47 = vsel %vm1318_vm2, %v1704_v35, 0.0  ;;  %v1713_v18 = vsel %vm1318_vm2, %v1705_v28, 0.0  ;;  %v1715_v3 = vsel %vm1318_vm2, %v1706_v40, 0.0  ;;  %v1708_v53 = vsel %vm2966_vm8, %v1681_v8, %v1697_v51 }
 0x726   :  { %v1714_v23 = vadd.f32 %v1713_v18, %v1712_v47  ;;  %v1717_v38 = vsel %vm1318_vm2, %v1707_v22, 0.0  ;;  %v1709_v56 = vsel %vm2966_vm8, %v1682_v46, %v1698_v49  ;;  %v1719_v12 = vsel %vm1318_vm2, %v1708_v53, 0.0 }
 0x727   :  { %v1710_v32 = vsel %vm2966_vm8, %v1683_v1, %v1699_v15  ;;  %v1721_v62 = vsel %vm1318_vm2, %v1709_v56, 0.0  ;;  %v1711_v20 = vsel %vm2966_vm8, %v1684_v26, %v1700_v9 }
 0x728   :  { %v1716_v29 = vadd.f32 %v1715_v3, %v1714_v23  ;;  %v1723_v33 = vsel %vm1318_vm2, %v1710_v32, 0.0  ;;  %v1725_v37 = vsel %vm1318_vm2, %v1711_v20, 0.0 }
 0x72a   :  { %v1718_v10 = vadd.f32 %v1717_v38, %v1716_v29 }
 0x72c   :  { %v1720_v34 = vadd.f32 %v1719_v12, %v1718_v10 }
 0x72e   :  { %v1722_v52 = vadd.f32 %v1721_v62, %v1720_v34 }
 0x730   :  { %v1724_v16 = vadd.f32 %v1723_v33, %v1722_v52 }
 0x732   :  { %v1726_v57 = vadd.f32 %v1725_v37, %v1724_v16 }
 0x734   :  { %1727 = vadd.xlane.f32.xlu1 %v1726_v57 }
 0x7a7   :  { %v1728_v2 = vpop.xlane.xlu1 %1727 }
 0x7a8   :  { %v1729_v55 = vrot.slane %v1728_v2, 4 }
 0x7aa   :  { %v1730_v60 = vadd.f32 %v1729_v55, %v1728_v2 }
 0x7ac   :  { %v1731_v24 = vrot.slane %v1730_v60, 2 }
 0x7ae   :  { %v1732_v14 = vadd.f32 %v1731_v24, %v1730_v60 }
 0x7b0   :  { %v1733_v4 = vrot.slane %v1732_v14, 1 }
 0x7b2   :  { %v1734_v13 = vadd.f32 %v1733_v4, %v1732_v14 }
 0x7b4   :  { %1819 = vpush %v1734_v13 }
 0x7e5   :  { %s1820_s7 = spop %1819 }
 0x7e6   :  { %s1736_s8 = smul.f32 0.015625, %s1820_s7 }
 0x7e8   :  { %1738 = sst [smem:[#allocation6 + $0x1]] %s1736_s8 }
 0x7e9   :  { %1756 = dma.smem_to_hbm %s1906_s4, 16, %s1754_s6, [#allocation7]  }
 0x7ea   :  { %1898 = dma.done.wait [#allocation5], 16  }
 0x7eb   :  { %1899 = vsyncadd [#allocation5], 4294967280 }
 0x7ec   :  { %1900 = dma.done.wait [#allocation7], 16  }
 0x7ed   :  { %1901 = vsyncadd [#allocation7], 4294967280 }
 0x7ee   :  { %1765 = sfence }
 0x7ef   :  { %1766 = vsyncpa [#allocation5], 1 }
 0x7f0   :  { %1767 = vsyncpa [#allocation7], 1 }

</bundles_post_ra>
